<compile_context>
chip_gen: v7x
topology: tpu7x:2x2x1
jax: 0.10.0
libtpu: 0.0.40
codegen_flags: <defaults>
</compile_context>

<pallas_src>
import jax
import jax.numpy as jnp
from jax.experimental import pallas as pl
from jax.experimental.pallas import tpu as pltpu


def _pick_row_tile(ho: int, wo: int, n_batch: int) -> int:
    """Pick TR (output rows per tile) s.t. TR | Ho and TR*Wo is lane-dense.

    The output block's last dim is TM = TR*Wo, so it must be a multiple of 128
    (lane-dense, unmasked stores) or equal to the full Ho*Wo extent.
    Prefer several grid steps so both v7x TensorCores get balanced work.
    """
    divisors = [d for d in range(1, ho + 1) if ho % d == 0]
    cands = [d for d in divisors if (d * wo) % 128 == 0]
    if not cands:
        return ho  # full-extent block (always a legal block shape)

    def score(tr):
        tm = tr * wo
        steps = n_batch * (ho // tr)
        s = 0.0
        if 128 <= tm <= 1024:
            s += 4.0
        if steps >= 8:
            s += 3.0
        elif steps >= 4:
            s += 2.0
        elif steps >= 2:
            s += 1.0
        s -= abs(tm - 512) / 8192.0  # mild preference for mid-size tiles
        return s

    return max(cands, key=score)


def _make_kernel(*, KH, KW, stride, dilation, TR, Wo, Cin, Cout):
    TM = TR * Wo

    def kernel(x_ref, w_ref, bias_ref, o_ref):
        # x_ref   : (Hp, Wp, Cin)       bf16, whole padded image of this batch item
        # w_ref   : (KH*KW, Cin, Cout)  bf16, BN scale already folded in
        # bias_ref: (1, Cout)           f32 folded BN bias
        # o_ref   : (Cout, TM)          output slab, lane dim = TM (lane-dense)
        r = pl.program_id(1)
        row0 = r * TR * stride  # first padded-input row needed by this tile
        acc = jnp.zeros((TM, Cout), jnp.float32)
        for kh in range(KH):
            for kw in range(KW):
                h0 = kh * dilation
                w0 = kw * dilation
                if stride == 1:
                    tap = x_ref[pl.ds(row0 + h0, TR), pl.ds(w0, Wo), :]
                else:
                    # Generic strided path (stride > 1): load contiguous rows,
                    # subsample with static strided slices on the value.
                    span = (TR - 1) * stride + 1
                    slab = x_ref[pl.ds(row0 + h0, span)]
                    tap = slab[::stride,
                               w0:w0 + (Wo - 1) * stride + 1:stride, :]
                a2 = tap.reshape(TM, Cin)                       # (TM, Cin) bf16
                acc += jnp.dot(a2, w_ref[kh * KW + kw],
                               preferred_element_type=jnp.float32)
        y = jnp.maximum(acc + bias_ref[...], 0.0)               # BN bias + ReLU
        o_ref[...] = y.T.astype(o_ref.dtype)                    # (Cout, TM)

    return kernel


def conv_bn_act(x, weight, gamma, beta, running_mean, running_var,
                *, stride=1, dilation=1, eps=1e-5):
    """Fused Conv2d(bias=False) + BatchNorm2d(eval) + ReLU.  NCHW in / NCHW out."""
    N, Cin, H, W = x.shape
    Cout, Cin_w, KH, KW = weight.shape
    assert Cin_w == Cin, "grouped / depthwise conv not supported"

    # padding = get_padding(kernel_size, stride, dilation) for pad_type=''
    pad = (stride - 1 + dilation * (KH - 1)) // 2
    Ho = (H + 2 * pad - dilation * (KH - 1) - 1) // stride + 1
    Wo = (W + 2 * pad - dilation * (KW - 1) - 1) // stride + 1
    Hp, Wp = H + 2 * pad, W + 2 * pad

    # ---- fold BatchNorm (running stats) : scale -> weights, keep bias only --
    scale = gamma.astype(jnp.float32) / jnp.sqrt(
        running_var.astype(jnp.float32) + eps)                       # (Cout,)
    bias = (beta.astype(jnp.float32)
            - running_mean.astype(jnp.float32) * scale).reshape(1, Cout)
    w_folded = weight.astype(jnp.float32) * scale[:, None, None, None]
    # (Cout, Cin, KH, KW) -> (KH, KW, Cin, Cout) -> (KH*KW, Cin, Cout), bf16
    w_taps = jnp.transpose(w_folded, (2, 3, 1, 0)).reshape(
        KH * KW, Cin, Cout).astype(jnp.bfloat16)

    # ---- activation prep: NCHW -> NHWC, zero pad, bf16 (no im2col) ----------
    x_nhwc = jnp.transpose(x, (0, 2, 3, 1))
    x_padded = jnp.pad(x_nhwc, ((0, 0), (pad, pad), (pad, pad), (0, 0)))
    x_padded = x_padded.astype(jnp.bfloat16)

    TR = _pick_row_tile(Ho, Wo, N)
    TM = TR * Wo
    grid = (N, Ho // TR)

    kernel = _make_kernel(KH=KH, KW=KW, stride=stride, dilation=dilation,
                          TR=TR, Wo=Wo, Cin=Cin, Cout=Cout)

    out = pl.pallas_call(
        kernel,
        out_shape=jax.ShapeDtypeStruct((N, Cout, Ho * Wo), x.dtype),
        grid_spec=pltpu.PrefetchScalarGridSpec(
            num_scalar_prefetch=0,
            grid=grid,
            in_specs=[
                # whole padded image of batch n; resident across the row axis
                pl.BlockSpec((None, Hp, Wp, Cin), lambda n, r: (n, 0, 0, 0)),
                # folded weights, resident
                pl.BlockSpec((KH * KW, Cin, Cout), lambda n, r: (0, 0, 0)),
                # folded BN bias, resident
                pl.BlockSpec((1, Cout), lambda n, r: (0, 0)),
            ],
            # (Cout, TM) slab of the (N, Cout, Ho*Wo) output; TM lane-dense
            out_specs=pl.BlockSpec((None, Cout, TM), lambda n, r: (n, 0, r)),
        ),
        compiler_params=pltpu.CompilerParams(
            dimension_semantics=("parallel", "parallel")),
    )(x_padded, w_taps, bias)

    # (N, Cout, Ho*Wo) -> (N, Cout, Ho, Wo): free reshape, already NCHW.
    return out.reshape(N, Cout, Ho, Wo)


if __name__ == "__main__":
    key = jax.random.PRNGKey(0)
    k1, k2, k3, k4, k5, k6 = jax.random.split(key, 6)

    # Small shapes consistent with the module: batch=2, in_chs=4, spatial=16,
    # out_chs=8, kernel_size=3, stride=1, dilation=1, pad_type='' (-> pad 1).
    N, Cin, H, W = 2, 4, 16, 16
    Cout, KH, KW = 8, 3, 3
    stride, dilation, eps = 1, 1, 1e-5

    x = jax.random.normal(k1, (N, Cin, H, W), dtype=jnp.float32)
    weight = jax.random.normal(k2, (Cout, Cin, KH, KW), dtype=jnp.float32) * 0.1
    gamma = jax.random.uniform(k3, (Cout,), minval=0.5, maxval=1.5,
                               dtype=jnp.float32)
    beta = jax.random.normal(k4, (Cout,), dtype=jnp.float32) * 0.1
    running_mean = jax.random.normal(k5, (Cout,), dtype=jnp.float32) * 0.1
    running_var = jax.random.uniform(k6, (Cout,), minval=0.5, maxval=1.5,
                                     dtype=jnp.float32)

    out = conv_bn_act(x, weight, gamma, beta, running_mean, running_var,
                      stride=stride, dilation=dilation, eps=eps)
    out = jax.block_until_ready(out)

    # --- reference: XLA conv + eval-mode BN + ReLU (full f32) ----------------
    pad = (stride - 1 + dilation * (KH - 1)) // 2
    ref_conv = jax.lax.conv_general_dilated(
        x, weight,
        window_strides=(stride, stride),
        padding=((pad, pad), (pad, pad)),
        rhs_dilation=(dilation, dilation),
        dimension_numbers=("NCHW", "OIHW", "NCHW"),
        precision=jax.lax.Precision.HIGHEST,
    )
    r_scale = gamma / jnp.sqrt(running_var + eps)
    r_bias = beta - running_mean * r_scale
    ref = ref_conv * r_scale.reshape(1, Cout, 1, 1) + r_bias.reshape(1, Cout, 1, 1)
    ref = jnp.maximum(ref, 0.0)

    assert out.shape == ref.shape and out.dtype == x.dtype
    # bf16 MXU operands, f32 accumulation -> small rounding vs. the f32 reference.
    assert jnp.allclose(out, ref, atol=3e-2, rtol=3e-2), "mismatch vs reference"

    print("KERNEL_OK")
</pallas_src>

<mosaic_0001>
module attributes {stable_mosaic.version = 11 : i64} {
  func.func @kernel(%arg0: i32, %arg1: i32, %arg2: memref<1x18x18x4xbf16, #tpu.memory_space<vmem>>, %arg3: memref<9x4x8xbf16, #tpu.memory_space<vmem>>, %arg4: memref<1x8xf32, #tpu.memory_space<vmem>>, %arg5: memref<1x8x128xf32, #tpu.memory_space<vmem>>) attributes {dimension_semantics = [#tpu.dimension_semantics<parallel>, #tpu.dimension_semantics<parallel>], iteration_bounds = array<i64: 2, 2>, scalar_prefetch = 0 : i64, scratch_operands = 0 : i64, tpu.core_type = #tpu.core_type<tc>, window_params = [{transform_indices = @transform_0, window_bounds = array<i64: 1, 18, 18, 4>}, {pipeline_mode = #tpu.pipeline_mode<synchronous>, transform_indices = @transform_1, window_bounds = array<i64: 9, 4, 8>}, {pipeline_mode = #tpu.pipeline_mode<synchronous>, transform_indices = @transform_2, window_bounds = array<i64: 1, 8>}, {transform_indices = @transform_3, window_bounds = array<i64: 1, 8, 128>}]} {
    %c8_i32 = arith.constant 8 : i32
    %0 = arith.muli %arg1, %c8_i32 : i32
    %c1_i32 = arith.constant 1 : i32
    %1 = arith.muli %0, %c1_i32 : i32
    %cst = arith.constant 0.000000e+00 : f32
    %2 = vector.broadcast %cst : f32 to vector<128x8xf32>
    %c0_i32 = arith.constant 0 : i32
    %3 = arith.addi %1, %c0_i32 : i32
    %c0 = arith.constant 0 : index
    %4 = arith.index_cast %3 : i32 to index
    %c0_0 = arith.constant 0 : index
    %c0_1 = arith.constant 0 : index
    %5 = vector.load %arg2[%c0, %4, %c0_0, %c0_1] : memref<1x18x18x4xbf16, #tpu.memory_space<vmem>>, vector<1x8x16x4xbf16>
    %6 = vector.shape_cast %5 : vector<1x8x16x4xbf16> to vector<8x16x4xbf16>
    %7 = vector.shape_cast %6 : vector<8x16x4xbf16> to vector<128x4xbf16>
    %c0_2 = arith.constant 0 : index
    %c0_3 = arith.constant 0 : index
    %c0_4 = arith.constant 0 : index
    %8 = vector.load %arg3[%c0_2, %c0_3, %c0_4] : memref<9x4x8xbf16, #tpu.memory_space<vmem>>, vector<1x4x8xbf16>
    %9 = vector.shape_cast %8 : vector<1x4x8xbf16> to vector<4x8xbf16>
    %cst_5 = arith.constant dense<0.000000e+00> : vector<128x8xf32>
    %10 = tpu.matmul %7, %9, %cst_5 {dimension_numbers = #tpu.dot_dimension_numbers<[1], [0], [0], [1], [0, 0, 1, 1], [], []>} : vector<128x4xbf16>, vector<4x8xbf16>, vector<128x8xf32> -> vector<128x8xf32>
    %11 = arith.addf %2, %10 : vector<128x8xf32>
    %c0_i32_6 = arith.constant 0 : i32
    %12 = arith.addi %1, %c0_i32_6 : i32
    %c0_7 = arith.constant 0 : index
    %13 = arith.index_cast %12 : i32 to index
    %c1 = arith.constant 1 : index
    %c0_8 = arith.constant 0 : index
    %14 = vector.load %arg2[%c0_7, %13, %c1, %c0_8] : memref<1x18x18x4xbf16, #tpu.memory_space<vmem>>, vector<1x8x16x4xbf16>
    %15 = vector.shape_cast %14 : vector<1x8x16x4xbf16> to vector<8x16x4xbf16>
    %16 = vector.shape_cast %15 : vector<8x16x4xbf16> to vector<128x4xbf16>
    %c1_9 = arith.constant 1 : index
    %c0_10 = arith.constant 0 : index
    %c0_11 = arith.constant 0 : index
    %17 = vector.load %arg3[%c1_9, %c0_10, %c0_11] : memref<9x4x8xbf16, #tpu.memory_space<vmem>>, vector<1x4x8xbf16>
    %18 = vector.shape_cast %17 : vector<1x4x8xbf16> to vector<4x8xbf16>
    %cst_12 = arith.constant dense<0.000000e+00> : vector<128x8xf32>
    %19 = tpu.matmul %16, %18, %cst_12 {dimension_numbers = #tpu.dot_dimension_numbers<[1], [0], [0], [1], [0, 0, 1, 1], [], []>} : vector<128x4xbf16>, vector<4x8xbf16>, vector<128x8xf32> -> vector<128x8xf32>
    %20 = arith.addf %11, %19 : vector<128x8xf32>
    %c0_i32_13 = arith.constant 0 : i32
    %21 = arith.addi %1, %c0_i32_13 : i32
    %c0_14 = arith.constant 0 : index
    %22 = arith.index_cast %21 : i32 to index
    %c2 = arith.constant 2 : index
    %c0_15 = arith.constant 0 : index
    %23 = vector.load %arg2[%c0_14, %22, %c2, %c0_15] : memref<1x18x18x4xbf16, #tpu.memory_space<vmem>>, vector<1x8x16x4xbf16>
    %24 = vector.shape_cast %23 : vector<1x8x16x4xbf16> to vector<8x16x4xbf16>
    %25 = vector.shape_cast %24 : vector<8x16x4xbf16> to vector<128x4xbf16>
    %c2_16 = arith.constant 2 : index
    %c0_17 = arith.constant 0 : index
    %c0_18 = arith.constant 0 : index
    %26 = vector.load %arg3[%c2_16, %c0_17, %c0_18] : memref<9x4x8xbf16, #tpu.memory_space<vmem>>, vector<1x4x8xbf16>
    %27 = vector.shape_cast %26 : vector<1x4x8xbf16> to vector<4x8xbf16>
    %cst_19 = arith.constant dense<0.000000e+00> : vector<128x8xf32>
    %28 = tpu.matmul %25, %27, %cst_19 {dimension_numbers = #tpu.dot_dimension_numbers<[1], [0], [0], [1], [0, 0, 1, 1], [], []>} : vector<128x4xbf16>, vector<4x8xbf16>, vector<128x8xf32> -> vector<128x8xf32>
    %29 = arith.addf %20, %28 : vector<128x8xf32>
    %c1_i32_20 = arith.constant 1 : i32
    %30 = arith.addi %1, %c1_i32_20 : i32
    %c0_21 = arith.constant 0 : index
    %31 = arith.index_cast %30 : i32 to index
    %c0_22 = arith.constant 0 : index
    %c0_23 = arith.constant 0 : index
    %32 = vector.load %arg2[%c0_21, %31, %c0_22, %c0_23] : memref<1x18x18x4xbf16, #tpu.memory_space<vmem>>, vector<1x8x16x4xbf16>
    %33 = vector.shape_cast %32 : vector<1x8x16x4xbf16> to vector<8x16x4xbf16>
    %34 = vector.shape_cast %33 : vector<8x16x4xbf16> to vector<128x4xbf16>
    %c3 = arith.constant 3 : index
    %c0_24 = arith.constant 0 : index
    %c0_25 = arith.constant 0 : index
    %35 = vector.load %arg3[%c3, %c0_24, %c0_25] : memref<9x4x8xbf16, #tpu.memory_space<vmem>>, vector<1x4x8xbf16>
    %36 = vector.shape_cast %35 : vector<1x4x8xbf16> to vector<4x8xbf16>
    %cst_26 = arith.constant dense<0.000000e+00> : vector<128x8xf32>
    %37 = tpu.matmul %34, %36, %cst_26 {dimension_numbers = #tpu.dot_dimension_numbers<[1], [0], [0], [1], [0, 0, 1, 1], [], []>} : vector<128x4xbf16>, vector<4x8xbf16>, vector<128x8xf32> -> vector<128x8xf32>
    %38 = arith.addf %29, %37 : vector<128x8xf32>
    %c1_i32_27 = arith.constant 1 : i32
    %39 = arith.addi %1, %c1_i32_27 : i32
    %c0_28 = arith.constant 0 : index
    %40 = arith.index_cast %39 : i32 to index
    %c1_29 = arith.constant 1 : index
    %c0_30 = arith.constant 0 : index
    %41 = vector.load %arg2[%c0_28, %40, %c1_29, %c0_30] : memref<1x18x18x4xbf16, #tpu.memory_space<vmem>>, vector<1x8x16x4xbf16>
    %42 = vector.shape_cast %41 : vector<1x8x16x4xbf16> to vector<8x16x4xbf16>
    %43 = vector.shape_cast %42 : vector<8x16x4xbf16> to vector<128x4xbf16>
    %c4 = arith.constant 4 : index
    %c0_31 = arith.constant 0 : index
    %c0_32 = arith.constant 0 : index
    %44 = vector.load %arg3[%c4, %c0_31, %c0_32] : memref<9x4x8xbf16, #tpu.memory_space<vmem>>, vector<1x4x8xbf16>
    %45 = vector.shape_cast %44 : vector<1x4x8xbf16> to vector<4x8xbf16>
    %cst_33 = arith.constant dense<0.000000e+00> : vector<128x8xf32>
    %46 = tpu.matmul %43, %45, %cst_33 {dimension_numbers = #tpu.dot_dimension_numbers<[1], [0], [0], [1], [0, 0, 1, 1], [], []>} : vector<128x4xbf16>, vector<4x8xbf16>, vector<128x8xf32> -> vector<128x8xf32>
    %47 = arith.addf %38, %46 : vector<128x8xf32>
    %c1_i32_34 = arith.constant 1 : i32
    %48 = arith.addi %1, %c1_i32_34 : i32
    %c0_35 = arith.constant 0 : index
    %49 = arith.index_cast %48 : i32 to index
    %c2_36 = arith.constant 2 : index
    %c0_37 = arith.constant 0 : index
    %50 = vector.load %arg2[%c0_35, %49, %c2_36, %c0_37] : memref<1x18x18x4xbf16, #tpu.memory_space<vmem>>, vector<1x8x16x4xbf16>
    %51 = vector.shape_cast %50 : vector<1x8x16x4xbf16> to vector<8x16x4xbf16>
    %52 = vector.shape_cast %51 : vector<8x16x4xbf16> to vector<128x4xbf16>
    %c5 = arith.constant 5 : index
    %c0_38 = arith.constant 0 : index
    %c0_39 = arith.constant 0 : index
    %53 = vector.load %arg3[%c5, %c0_38, %c0_39] : memref<9x4x8xbf16, #tpu.memory_space<vmem>>, vector<1x4x8xbf16>
    %54 = vector.shape_cast %53 : vector<1x4x8xbf16> to vector<4x8xbf16>
    %cst_40 = arith.constant dense<0.000000e+00> : vector<128x8xf32>
    %55 = tpu.matmul %52, %54, %cst_40 {dimension_numbers = #tpu.dot_dimension_numbers<[1], [0], [0], [1], [0, 0, 1, 1], [], []>} : vector<128x4xbf16>, vector<4x8xbf16>, vector<128x8xf32> -> vector<128x8xf32>
    %56 = arith.addf %47, %55 : vector<128x8xf32>
    %c2_i32 = arith.constant 2 : i32
    %57 = arith.addi %1, %c2_i32 : i32
    %c0_41 = arith.constant 0 : index
    %58 = arith.index_cast %57 : i32 to index
    %c0_42 = arith.constant 0 : index
    %c0_43 = arith.constant 0 : index
    %59 = vector.load %arg2[%c0_41, %58, %c0_42, %c0_43] : memref<1x18x18x4xbf16, #tpu.memory_space<vmem>>, vector<1x8x16x4xbf16>
    %60 = vector.shape_cast %59 : vector<1x8x16x4xbf16> to vector<8x16x4xbf16>
    %61 = vector.shape_cast %60 : vector<8x16x4xbf16> to vector<128x4xbf16>
    %c6 = arith.constant 6 : index
    %c0_44 = arith.constant 0 : index
    %c0_45 = arith.constant 0 : index
    %62 = vector.load %arg3[%c6, %c0_44, %c0_45] : memref<9x4x8xbf16, #tpu.memory_space<vmem>>, vector<1x4x8xbf16>
    %63 = vector.shape_cast %62 : vector<1x4x8xbf16> to vector<4x8xbf16>
    %cst_46 = arith.constant dense<0.000000e+00> : vector<128x8xf32>
    %64 = tpu.matmul %61, %63, %cst_46 {dimension_numbers = #tpu.dot_dimension_numbers<[1], [0], [0], [1], [0, 0, 1, 1], [], []>} : vector<128x4xbf16>, vector<4x8xbf16>, vector<128x8xf32> -> vector<128x8xf32>
    %65 = arith.addf %56, %64 : vector<128x8xf32>
    %c2_i32_47 = arith.constant 2 : i32
    %66 = arith.addi %1, %c2_i32_47 : i32
    %c0_48 = arith.constant 0 : index
    %67 = arith.index_cast %66 : i32 to index
    %c1_49 = arith.constant 1 : index
    %c0_50 = arith.constant 0 : index
    %68 = vector.load %arg2[%c0_48, %67, %c1_49, %c0_50] : memref<1x18x18x4xbf16, #tpu.memory_space<vmem>>, vector<1x8x16x4xbf16>
    %69 = vector.shape_cast %68 : vector<1x8x16x4xbf16> to vector<8x16x4xbf16>
    %70 = vector.shape_cast %69 : vector<8x16x4xbf16> to vector<128x4xbf16>
    %c7 = arith.constant 7 : index
    %c0_51 = arith.constant 0 : index
    %c0_52 = arith.constant 0 : index
    %71 = vector.load %arg3[%c7, %c0_51, %c0_52] : memref<9x4x8xbf16, #tpu.memory_space<vmem>>, vector<1x4x8xbf16>
    %72 = vector.shape_cast %71 : vector<1x4x8xbf16> to vector<4x8xbf16>
    %cst_53 = arith.constant dense<0.000000e+00> : vector<128x8xf32>
    %73 = tpu.matmul %70, %72, %cst_53 {dimension_numbers = #tpu.dot_dimension_numbers<[1], [0], [0], [1], [0, 0, 1, 1], [], []>} : vector<128x4xbf16>, vector<4x8xbf16>, vector<128x8xf32> -> vector<128x8xf32>
    %74 = arith.addf %65, %73 : vector<128x8xf32>
    %c2_i32_54 = arith.constant 2 : i32
    %75 = arith.addi %1, %c2_i32_54 : i32
    %c0_55 = arith.constant 0 : index
    %76 = arith.index_cast %75 : i32 to index
    %c2_56 = arith.constant 2 : index
    %c0_57 = arith.constant 0 : index
    %77 = vector.load %arg2[%c0_55, %76, %c2_56, %c0_57] : memref<1x18x18x4xbf16, #tpu.memory_space<vmem>>, vector<1x8x16x4xbf16>
    %78 = vector.shape_cast %77 : vector<1x8x16x4xbf16> to vector<8x16x4xbf16>
    %79 = vector.shape_cast %78 : vector<8x16x4xbf16> to vector<128x4xbf16>
    %c8 = arith.constant 8 : index
    %c0_58 = arith.constant 0 : index
    %c0_59 = arith.constant 0 : index
    %80 = vector.load %arg3[%c8, %c0_58, %c0_59] : memref<9x4x8xbf16, #tpu.memory_space<vmem>>, vector<1x4x8xbf16>
    %81 = vector.shape_cast %80 : vector<1x4x8xbf16> to vector<4x8xbf16>
    %cst_60 = arith.constant dense<0.000000e+00> : vector<128x8xf32>
    %82 = tpu.matmul %79, %81, %cst_60 {dimension_numbers = #tpu.dot_dimension_numbers<[1], [0], [0], [1], [0, 0, 1, 1], [], []>} : vector<128x4xbf16>, vector<4x8xbf16>, vector<128x8xf32> -> vector<128x8xf32>
    %83 = arith.addf %74, %82 : vector<128x8xf32>
    %c0_61 = arith.constant 0 : index
    %c0_62 = arith.constant 0 : index
    %84 = vector.load %arg4[%c0_61, %c0_62] : memref<1x8xf32, #tpu.memory_space<vmem>>, vector<1x8xf32>
    %85 = vector.broadcast %84 : vector<1x8xf32> to vector<128x8xf32>
    %86 = arith.addf %83, %85 : vector<128x8xf32>
    %cst_63 = arith.constant 0.000000e+00 : f32
    %87 = vector.broadcast %cst_63 : f32 to vector<128x8xf32>
    %88 = arith.maximumf %86, %87 : vector<128x8xf32>
    %89 = tpu.transpose %88, [1, 0] : vector<128x8xf32> -> vector<8x128xf32>
    %c0_64 = arith.constant 0 : index
    %c0_65 = arith.constant 0 : index
    %c0_66 = arith.constant 0 : index
    %90 = vector.load %arg5[%c0_64, %c0_65, %c0_66] : memref<1x8x128xf32, #tpu.memory_space<vmem>>, vector<1x8x128xf32>
    %91 = vector.shape_cast %90 : vector<1x8x128xf32> to vector<8x128xf32>
    %92 = vector.shape_cast %89 : vector<8x128xf32> to vector<1x8x128xf32>
    tpu.vector_store %arg5[%c0_64, %c0_65, %c0_66], %92 {strides = array<i32>} : memref<1x8x128xf32, #tpu.memory_space<vmem>>, vector<1x8x128xf32>,
    return
  }
  func.func @transform_0(%arg0: i32, %arg1: i32) -> (i32, i32, i32, i32) {
    %c0_i32 = arith.constant 0 : i32
    %c0_i32_0 = arith.constant 0 : i32
    %c0_i32_1 = arith.constant 0 : i32
    %c0_i32_2 = arith.constant 0 : i32
    return %arg0, %c0_i32, %c0_i32_0, %c0_i32_1 : i32, i32, i32, i32
  }
  func.func @transform_1(%arg0: i32, %arg1: i32) -> (i32, i32, i32) {
    %c0_i32 = arith.constant 0 : i32
    %c0_i32_0 = arith.constant 0 : i32
    %c0_i32_1 = arith.constant 0 : i32
    %c0_i32_2 = arith.constant 0 : i32
    return %c0_i32, %c0_i32_0, %c0_i32_1 : i32, i32, i32
  }
  func.func @transform_2(%arg0: i32, %arg1: i32) -> (i32, i32) {
    %c0_i32 = arith.constant 0 : i32
    %c0_i32_0 = arith.constant 0 : i32
    %c0_i32_1 = arith.constant 0 : i32
    return %c0_i32, %c0_i32_0 : i32, i32
  }
  func.func @transform_3(%arg0: i32, %arg1: i32) -> (i32, i32, i32) {
    %c0_i32 = arith.constant 0 : i32
    %c0_i32_0 = arith.constant 0 : i32
    return %arg0, %c0_i32, %arg1 : i32, i32, i32
  }
}

</mosaic_0001>

<bundles_post_ra>
// kernel: tpu_custom_call.1
= control target key start
LH: loop header
LB: loop body
LE: loop exit
PB: predicated region body
PF: predicated region fallthrough
CT: control target
= control target key end

     0   :  { %8 = vsyncpa [#allocation3], 0  ;;  %s4723_s0 = inlined_call_operand.vmem [shape: bf16[2,18,18,4], index: 0, kind: input, shape index: {}]   ;;  %s4724_s1 = inlined_call_operand.vmem [shape: bf16[9,4,8], index: 1, kind: input, shape index: {}]   ;;  %s4725_s2 = inlined_call_operand.vmem [shape: f32[1,8], index: 2, kind: input, shape index: {}]   ;;  %s4726_s3 = inlined_call_operand.hbm [shape: f32[2,8,256], index: 3, kind: output, shape index: {}]  }
   0x1   :  { %10 = vsyncpa [#allocation3 + $0x1], 0  ;;  %s3709_s12 = smov 0   ;;  %s3711_s13 = smov 0  }
   0x2   :  { %s3713_s14 = smov 0   ;;  %s3715_s15 = smov 0  }
   0x3   :  { %s3717_s16 = smov 0   ;;  %s3719_s17 = smov 0  }
   0x4   :  { %s3721_s18 = smov 0   ;;  %s3723_s19 = smov 0  }
   0x5 LB: > { %s2819_s20 = sadd.s32 4294967295, %s3686_s19   ;;  %s2820_s21 = sadd.s32 4294967294, %s3686_s19   ;;  %s3686_s19 = sphi %s3723_s19, %s16_s19   ;;  %s3682_s18 = sphi %s3721_s18, %s4757_s18   ;;  %s3678_s17 = sphi %s3719_s17, %s4756_s17   ;;  %s3674_s16 = sphi %s3717_s16, %s4755_s16   ;;  %s3670_s15 = sphi %s3715_s15, %s4754_s15   ;;  %s3666_s14 = sphi %s3713_s14, %s4753_s14   ;;  %s3662_s13 = sphi %s3711_s13, %s4752_s13   ;;  %s3658_s12 = sphi %s3709_s12, %s4751_s12  }
   0x6   : > { %s25_s22 = sadd.s32 1, %s3678_s17  ;;  %s28_s23 = sadd.s32 1, %s3682_s18 }
   0x7   : > { %p26_p0 = scmp.ge.s32.totalorder %s25_s22, 2  ;;  %p115_p1 = scmp.ne.s32.totalorder %s3666_s14, %s3662_s13 }
   0x8   : > { %p116_p2 = scmp.eq.s32.totalorder %s2819_s20, 3  ;;  %p121_p5 = scmp.ne.s32.totalorder %s3662_s13, %s3658_s12 }
   0x9   : > { %s4759_s22 = smov (%p26_p0, %s25_s22), 0  ;;  %s4761_s23 = smov (!%p26_p0, %s28_s23), %s3682_s18 }
   0xa   : > { %s101_s24 = ssub.s32 %s3678_s17, %s4759_s22  ;;  %p3760_p3 = por %p116_p2, %p115_p1 }
   0xb   : > { %p30_p4 = scmp.ge.s32.totalorder %s4761_s23, 2  ;;  %p122_p6 = scmp.eq.s32.totalorder %s2820_s21, 3 }
   0xc   : > { %p2823_p7 = scmp.ge.s32.totalorder %s3686_s19, 1  ;;  %p154_p9 = scmp.lt.s32.totalorder %s3686_s19, 5 }
   0xd   : > { %s4763_s23 = smov (%p30_p4, %s4761_s23), 0  ;;  %p3769_p8 = por %p122_p6, %p121_p5 }
   0xe   : > { %s100_s27 = ssub.s32 %s3682_s18, %s4763_s23  ;;  %s105_s28 = sadd.s32 1, %s3666_s14 }
   0xf   : > { %s102_s29 = sor.u32 %s101_s24, %s100_s27  ;;  %p155_p10 = pnand %p2823_p7, %p154_p9 }
  0x10   : > { %p103_p11 = scmp.eq.s32.totalorder %s102_s29, 0 }
  0x11   : > { %158 = sbr.rel (%p155_p10) target bundleno = 544 (0x220), region = 32 }
  0x12   : > { %s3778_s30 = scalar_select %p103_p11, %s3666_s14, %s105_s28  }
  0x18   : > { %vm459_vm0 = vcmask 1041408   ;;  %v2946_v0 = vld [vmem:[%s4724_s1 + $0x8] sm:$0x3]  ;;  %v2829_v1 = vld [vmem:[%s4724_s1 + $0x2] sm:$0x3]  ;;  %p178_p12 = scmp.lt.s32.totalorder %s3674_s16, 1 }
  0x19   : > { %3489 = vmatprep.subr.msk.bf16.mxu0 %vm459_vm0, %v2946_v0  ;;  %3485 = vmatprep.subr.msk.bf16.mxu1 %vm459_vm0, %v2829_v1  ;;  %v3790_v2 = vsel %vm459_vm0, %v2946_v0, 0  ;;  %v461_v3 = vsel %vm459_vm0, %v2829_v1, 0  ;;  %v2979_v4 = vld [vmem:[%s4724_s1 + $0xa] sm:$0x3]  ;;  %s3111_s11 = smul.u32 96, %s3670_s15  ;;  %vm434_vm3 = vcmask 31744  }
  0x1a   : > { %3266 = vmatpush3.bf16.msra.mxu0 %v3790_v2  ;;  %3194 = vmatpush3.bf16.msra.mxu1 %v461_v3  ;;  %s179_s8 = scalar_select %p178_p12, %s3674_s16, 1  ;;  %v204_v5 = vld [vmem:[%s4724_s1] sm:$0x3]  ;;  %vm213_vm1 = vsmask.f32 3328  ;;  %v3831_v17 = vsel %vm459_vm0, %v2979_v4, 0 }
  0x1b   : > { %3491 = vmatprep.subr.msk.bf16.mxu0 %vm459_vm0, %v2979_v4  ;;  %3486 = vmatprep.subr.msk.bf16.mxu1 %vm459_vm0, %v204_v5  ;;  %vm214_vm2 = vsmask.f32 7440  ;;  %v3837_v26 = vld [vmem:[%s4724_s1 + $0xc] sm:$0x3]  ;;  %v3854_v37 = vsel %vm459_vm0, %v204_v5, 0  ;;  %vm748_vm5 = vcmask 1042432  }
  0x1c   : > { %s3495_s24 = smul.u32 216, %s179_s8  ;;  %vm3846_vm4 = vmor %vm213_vm1, %vm214_vm2  ;;  %v3858_v41 = vsel %vm459_vm0, %v3837_v26, 0  ;;  %vm749_vm6 = vcmask 1046532   ;;  %v4646_v32 = vld [vmem:[%s4725_s2] ss:$0 sm:$0xff]  ;;  %s175_s5 = sand.u32 1, %s3662_s13  }
  0x1d   : > { %vm4001_vm7 = vmor %vm748_vm5, %vm749_vm6  ;;  %s2824_s6 = sshll.u32 %s175_s5, 3  ;;  %s3107_s7 = sshll.u32 %s3674_s16, 1 }
  0x1e   : > { %s182_s29 = scalar_lea.vmem %s4723_s0, %s3495_s24  ;;  %s2733_s8 = sadd.s32 %s3670_s15, %s3107_s7 }
  0x1f   : > { %s3807_s4 = scalar_lea.vmem %s182_s29, %s3111_s11  ;;  %s177_s9 = scalar_lea.vmem [#allocation2], %s2824_s6 }
  0x20   : > { %v3810_v6 = vld [vmem:[%s3807_s4] sm:$0xf]  ;;  %v3813_v7 = vld [vmem:[%s3807_s4 + $0x4] sm:$0xf]  ;;  %v3816_v8 = vld [vmem:[%s3807_s4 + $0x8] sm:$0x1] }
  0x21   : > { %v217_v9 = vshrl.u32 %v3810_v6, 16  ;;  %v220_v10 = vshll.u32 %v3810_v6, 16  ;;  %v226_v11 = vshll.u32 %v3813_v7, 16  ;;  %v230_v12 = vshrl.u32 %v3813_v7, 16  ;;  %v2922_v13 = vld [vmem:[%s3807_s4 + $0xc] sm:$0xf] }
  0x22   : > { %v236_v14 = vshll.u32 %v3816_v8, 16  ;;  %v3825_v15 = vld [vmem:[%s3807_s4 + $0x10] sm:$0xf]  ;;  %v3828_v16 = vld [vmem:[%s3807_s4 + $0x14] sm:$0x1]  ;;  %v1200_v23 = vshrl.u32 %v2922_v13, 16 }
  0x23   : > { %v219_v18 = vrot.slane %v217_v9, 4  ;;  %v222_v19 = vrot.slane %v220_v10, 5  ;;  %v228_v20 = vrot.slane %v226_v11, 5  ;;  %v232_v21 = vrot.slane %v230_v12, 4  ;;  %v3842_v31 = vld [vmem:[%s3807_s4 + $0xc] sm:$0xf] }
  0x24   : > { %v238_v22 = vrot.slane %v236_v14, 5  ;;  %v1203_v24 = vshll.u32 %v2922_v13, 16  ;;  %v1209_v25 = vshll.u32 %v3825_v15, 16  ;;  %v1213_v29 = vshrl.u32 %v3825_v15, 16  ;;  %v3851_v36 = vld [vmem:[%s3807_s4 + $0x10] sm:$0xf] }
  0x25   : > { %v223_v27 = vor.u32 %v222_v19, %v219_v18  ;;  %v233_v28 = vor.u32 %v232_v21, %v228_v20  ;;  %v1219_v30 = vshll.u32 %v3828_v16, 16  ;;  %v1202_v33 = vrot.slane %v1200_v23, 4  ;;  %v3861_v44 = vld [vmem:[%s3807_s4 + $0x14] sm:$0x1]  ;;  %v2925_v55 = vld [vmem:[%s3807_s4 + $0x18] sm:$0xf] }
  0x26   : > { %v1205_v34 = vrot.slane %v1203_v24, 5  ;;  %v1211_v35 = vrot.slane %v1209_v25, 5  ;;  %v1215_v40 = vrot.slane %v1213_v29, 4  ;;  %v241_v45 = vshrl.u32 %v3842_v31, 16  ;;  %v3874_v60 = vld [vmem:[%s3807_s4 + $0x1c] sm:$0xf] }
  0x27   : > { %v224_v38 = vrot.slane %v223_v27, 4  ;;  %v234_v39 = vrot.slane %v233_v28, 4  ;;  %v1221_v43 = vrot.slane %v1219_v30, 5  ;;  %v244_v46 = vshll.u32 %v3842_v31, 16  ;;  %v3882_v1 = vld [vmem:[%s3807_s4 + $0x20] sm:$0x1] }
  0x28   : > { %v1206_v42 = vor.u32 %v1205_v34, %v1202_v33  ;;  %v1216_v49 = vor.u32 %v1215_v40, %v1211_v35  ;;  %v250_v50 = vshll.u32 %v3851_v36, 16  ;;  %v243_v53 = vrot.slane %v241_v45, 4  ;;  %v3890_v21 = vld [vmem:[%s3807_s4 + $0x18] sm:$0xf]  ;;  %v3897_v27 = vld [vmem:[%s3807_s4 + $0x1c] sm:$0xf] }
  0x29   : > { %v229_v47 = vsel %vm3846_vm4, %v224_v38, %v228_v20  ;;  %v239_v48 = vsel %vm3846_vm4, %v234_v39, %v238_v22  ;;  %v246_v54 = vrot.slane %v244_v46, 5  ;;  %v254_v58 = vshrl.u32 %v3851_v36, 16  ;;  %v3905_v38 = vld [vmem:[%s3807_s4 + $0x20] sm:$0x1]  ;;  %s2737_s10 = sshll.u32 %s177_s9, 4  ;;  %s3108_s11 = sshll.u32 %s2733_s8, 7  ;;  %s4667_s10 = int_to_ptr.vmem [resolvable:$true] %s2737_s10 }
  0x2a   : > { %v2830_v51 = vcombine.low %v229_v47, %v239_v48  ;;  %v1207_v52 = vrot.slane %v1206_v42, 4  ;;  %v1217_v56 = vrot.slane %v1216_v49, 4  ;;  %v252_v57 = vrot.slane %v250_v50, 5  ;;  %v2928_v47 = vld [vmem:[%s3807_s4 + $0x24] sm:$0xf]  ;;  %s4672_s24 = scalar_lea.hbm %s4726_s3, %s3108_s11  ;;  %s2722_s27 = scalar_lea.sflag [#allocation3], %s175_s5 }
  0x2b   : > { %v260_v59 = vshll.u32 %v3861_v44, 16  ;;  %v1591_v62 = vrot.slane %v3825_v15, 5  ;;  %v1594_v63 = vrot.slane %v3828_v16, 5  ;;  %v247_v0 = vor.u32 %v246_v54, %v243_v53  ;;  %s3592_s28 = scalar_lea.vmem %s4667_s10, 128  ;;  %s3688_s15 = smov [#allocation2]  }
  0x2c   : > { %3195 = vmatprep.mubr.msk.bf16.mxu1 %vm434_vm3, %v2830_v51  ;;  %v1212_v61 = vsel %vm3846_vm4, %v1207_v52, %v1211_v35  ;;  %v1222_v3 = vsel %vm3846_vm4, %v1217_v56, %v1221_v43  ;;  %v256_v4 = vrot.slane %v254_v58, 4  ;;  %v1224_v9 = vshrl.u32 %v2925_v55, 16  ;;  %v3915_v52 = vld [vmem:[%s3807_s4 + $0x28] sm:$0xf]  ;;  %p3593_p13 = scmp.ne.s32.totalorder %s4667_s10, %s3592_s28  ;;  %s3596_s16 = sshll.u32 %s3688_s15, 4  ;;  %s3597_s16 = int_to_ptr.vmem [resolvable:$false] %s3596_s16 }
  0x2d   : > { %v262_v5 = vrot.slane %v260_v59, 5  ;;  %v2947_v10 = vcombine.low %v1212_v61, %v1222_v3  ;;  %v248_v11 = vrot.slane %v247_v0, 4  ;;  %v1227_v12 = vshll.u32 %v2925_v55, 16  ;;  %v3927_v61 = vld [vmem:[%s3807_s4 + $0x2c] sm:$0x1]  ;;  %s3598_s29 = scalar_lea.vmem %s3597_s16, 256  ;;  %p3599_p2 = scmp.lt.s32.totalorder %s4667_s10, %s3597_s16 }
  0x2e   : > { %v1233_v13 = vshll.u32 %v3874_v60, 16  ;;  %v257_v14 = vor.u32 %v256_v4, %v252_v57  ;;  %v1226_v18 = vrot.slane %v1224_v9, 4  ;;  %v1237_v19 = vshrl.u32 %v3874_v60, 16  ;;  %p3594_p0 = pnand %p3593_p13, %p3760_p3  ;;  %p3600_p4 = scmp.lt.s32.totalorder %s3598_s29, %s3592_s28 }
  0x2f   : > { %v1243_v20 = vshll.u32 %v3882_v1, 16  ;;  %3267 = vmatprep.mubr.msk.bf16.mxu0 %vm434_vm3, %v2947_v10  ;;  %v253_v22 = vsel %vm3846_vm4, %v248_v11, %v252_v57  ;;  %v1229_v23 = vrot.slane %v1227_v12, 5  ;;  %v1598_v25 = vrot.slane %v3874_v60, 5  ;;  %v3921_v57 = vld [vmem:[%s4724_s1 + $0x4] sm:$0x3] }
  0x30   : > { %v1235_v24 = vrot.slane %v1233_v13, 5  ;;  %v258_v28 = vrot.slane %v257_v14, 4  ;;  %v1239_v29 = vrot.slane %v1237_v19, 4  ;;  %v1601_v33 = vrot.slane %v3882_v1, 5  ;;  %v3933_v11 = vld [vmem:[%s3807_s4 + $0x24] sm:$0xf]  ;;  %p3595_p1 = pneg %p3594_p0  ;;  %p3601_p5 = por %p3600_p4, %p3599_p2 }
  0x31   : > { %v1245_v30 = vrot.slane %v1243_v20, 5  ;;  %v1230_v34 = vor.u32 %v1229_v23, %v1226_v18  ;;  %v3902_v35 = vrot.slane %v1598_v25, 4  ;;  %v265_v39 = vshrl.u32 %v3890_v21, 16  ;;  %v3937_v19 = vld [vmem:[%s3807_s4 + $0x28] sm:$0xf] }
  0x32   : > { %v268_v40 = vshll.u32 %v3890_v21, 16  ;;  %v263_v42 = vsel %vm3846_vm4, %v258_v28, %v262_v5  ;;  %v1240_v43 = vor.u32 %v1239_v29, %v1235_v24  ;;  %v274_v45 = vshll.u32 %v3897_v27, 16  ;;  %v3947_v29 = vld [vmem:[%s3807_s4 + $0x2c] sm:$0x1]  ;;  %p3602_p6 = pnand %p3601_p5, %p3595_p1 }
  0x33   : > { %v278_v46 = vshrl.u32 %v3897_v27, 16  ;;  %v2831_v48 = vcombine.low %v253_v22, %v263_v42  ;;  %v1231_v49 = vrot.slane %v1230_v34, 4  ;;  %v267_v50 = vrot.slane %v265_v39, 4 }
  0x34   : > { %v270_v51 = vrot.slane %v268_v40, 5  ;;  %v1241_v53 = vrot.slane %v1240_v43, 4  ;;  %v276_v54 = vrot.slane %v274_v45, 5  ;;  %v284_v56 = vshll.u32 %v3905_v38, 16  ;;  %v2931_v45 = vld [vmem:[%s3807_s4 + $0x30] sm:$0xf] }
  0x35   : > { %v280_v55 = vrot.slane %v278_v46, 4  ;;  %3196 = vmatmul.mubr.msk.bf16.vlgmr.msra.gmra.mrb[0].mxu1 %vm434_vm3, %v2831_v48  ;;  %v1236_v58 = vsel %vm3846_vm4, %v1231_v49, %v1235_v24  ;;  %v1248_v0 = vshrl.u32 %v2928_v47, 16  ;;  %v1251_v3 = vshll.u32 %v2928_v47, 16 }
  0x36   : > { %v271_v59 = vor.u32 %v270_v51, %v267_v50  ;;  %v1246_v4 = vsel %vm3846_vm4, %v1241_v53, %v1245_v30  ;;  %v286_v9 = vrot.slane %v284_v56, 5  ;;  %v1257_v10 = vshll.u32 %v3915_v52, 16  ;;  %3212 = vmatpush3.bf16.msra.mxu1 %v3854_v37  ;;  %v3957_v50 = vld [vmem:[%s3807_s4 + $0x34] sm:$0xf] }
  0x37   : > { %v281_v5 = vor.u32 %v280_v55, %v276_v54  ;;  %v2948_v12 = vcombine.low %v1236_v58, %v1246_v4  ;;  %v1250_v14 = vrot.slane %v1248_v0, 4  ;;  %v1253_v18 = vrot.slane %v1251_v3, 5  ;;  %3487 = vmatprep.subr.msk.bf16.mxu1 %vm459_vm0, %v3921_v57  ;;  %v3967_v58 = vld [vmem:[%s3807_s4 + $0x38] sm:$0x1] }
  0x38   : > { %v272_v13 = vrot.slane %v271_v59, 4  ;;  %v1259_v22 = vrot.slane %v1257_v10, 5  ;;  %v1261_v23 = vshrl.u32 %v3915_v52, 16  ;;  %v1267_v24 = vshll.u32 %v3927_v61, 16 }
  0x39   : > { %v282_v20 = vrot.slane %v281_v5, 4  ;;  %3268 = vmatmul.mubr.msk.bf16.vlgmr.msra.gmra.mrb[0].mxu0 %vm434_vm3, %v2948_v12  ;;  %v1254_v28 = vor.u32 %v1253_v18, %v1250_v14  ;;  %v289_v30 = vshrl.u32 %v3933_v11, 16  ;;  %v292_v34 = vshll.u32 %v3933_v11, 16  ;;  %v3972_v14 = vld [vmem:[%s3807_s4 + $0x30] sm:$0xf] }
  0x3a   : > { %v277_v37 = vsel %vm3846_vm4, %v272_v13, %v276_v54  ;;  %3284 = vmatpush3.bf16.msra.mxu0 %v3831_v17  ;;  %v1263_v40 = vrot.slane %v1261_v23, 4  ;;  %v1269_v42 = vrot.slane %v1267_v24, 5  ;;  %v298_v43 = vshll.u32 %v3937_v19, 16  ;;  %v3978_v24 = vld [vmem:[%s3807_s4 + $0x34] sm:$0xf] }
  0x3b   : > { %v287_v39 = vsel %vm3846_vm4, %v282_v20, %v286_v9  ;;  %v1255_v47 = vrot.slane %v1254_v28, 4  ;;  %v291_v48 = vrot.slane %v289_v30, 4  ;;  %v294_v49 = vrot.slane %v292_v34, 5  ;;  %3492 = vmatprep.subr.msk.bf16.mxu0 %vm459_vm0, %v3837_v26 }
  0x3c   : > { %v2832_v46 = vcombine.low %v277_v37, %v287_v39  ;;  %v1264_v17 = vor.u32 %v1263_v40, %v1259_v22  ;;  %v300_v51 = vrot.slane %v298_v43, 5  ;;  %v302_v53 = vshrl.u32 %v3937_v19, 16  ;;  %v3983_v39 = vld [vmem:[%s3807_s4 + $0x38] sm:$0x1] }
  0x3d   : > { %v308_v54 = vshll.u32 %v3947_v29, 16  ;;  %v1260_v55 = vsel %vm3846_vm4, %v1255_v47, %v1259_v22  ;;  %v295_v56 = vor.u32 %v294_v49, %v291_v48  ;;  %v1272_v59 = vshrl.u32 %v2931_v45, 16 }
  0x3e   : > { %3199 = vmatprep.mubr.msk.bf16.mxu1 %vm434_vm3, %v2832_v46  ;;  %v1275_v0 = vshll.u32 %v2931_v45, 16  ;;  %v1265_v3 = vrot.slane %v1264_v17, 4  ;;  %v304_v26 = vrot.slane %v302_v53, 4  ;;  %v1281_v5 = vshll.u32 %v3957_v50, 16  ;;  %v2963_v17 = vld [vmem:[%s3807_s4 + $0xc] sm:$0xe] }
  0x3f   : > { %v310_v4 = vrot.slane %v308_v54, 5  ;;  %v296_v9 = vrot.slane %v295_v56, 4  ;;  %v1274_v10 = vrot.slane %v1272_v59, 4  ;;  %v1285_v13 = vshrl.u32 %v3957_v50, 16  ;;  %v3995_v56 = vld [vmem:[%s3807_s4 + $0x3c] sm:$0xf] }
  0x40   : > { %v1277_v12 = vrot.slane %v1275_v0, 5  ;;  %v1270_v18 = vsel %vm3846_vm4, %v1265_v3, %v1269_v42  ;;  %v305_v20 = vor.u32 %v304_v26, %v300_v51  ;;  %v1283_v22 = vrot.slane %v1281_v5, 5 }
  0x41   : > { %v1291_v23 = vshll.u32 %v3967_v58, 16  ;;  %v2949_v37 = vcombine.low %v1260_v55, %v1270_v18  ;;  %v301_v28 = vsel %vm3846_vm4, %v296_v9, %v300_v51  ;;  %v1287_v34 = vrot.slane %v1285_v13, 4  ;;  %v4009_v18 = vld [vmem:[%s3807_s4 + $0x44] sm:$0x1] }
  0x42   : > { %v1278_v30 = vor.u32 %v1277_v12, %v1274_v10  ;;  %v306_v40 = vrot.slane %v305_v20, 4  ;;  %v313_v42 = vshrl.u32 %v3972_v14, 16  ;;  %v316_v45 = vshll.u32 %v3972_v14, 16  ;;  %v2964_v20 = vld [vmem:[%s3807_s4 + $0x18] sm:$0xe] }
  0x43   : > { %v1293_v43 = vrot.slane %v1291_v23, 5  ;;  %3271 = vmatprep.mubr.msk.bf16.mxu0 %vm434_vm3, %v2949_v37  ;;  %v1288_v47 = vor.u32 %v1287_v34, %v1283_v22  ;;  %v322_v48 = vshll.u32 %v3978_v24, 16  ;;  %v326_v49 = vshrl.u32 %v3978_v24, 16 }
  0x44   : > { %v1279_v46 = vrot.slane %v1278_v30, 4  ;;  %v311_v51 = vsel %vm3846_vm4, %v306_v40, %v310_v4  ;;  %v315_v53 = vrot.slane %v313_v42, 4  ;;  %v318_v54 = vrot.slane %v316_v45, 5  ;;  %v4006_v4 = vld [vmem:[%s3807_s4 + $0x40] sm:$0xf] }
  0x45   : > { %v332_v55 = vshll.u32 %v3983_v39, 16  ;;  %v2833_v59 = vcombine.low %v301_v28, %v311_v51  ;;  %v1289_v3 = vrot.slane %v1288_v47, 4  ;;  %v324_v26 = vrot.slane %v322_v48, 5  ;;  %v4020_v30 = vld [vmem:[%s3807_s4 + $0x48] sm:$0xf] }
  0x46   : > { %v1284_v0 = vsel %vm3846_vm4, %v1279_v46, %v1283_v22  ;;  %v319_v9 = vor.u32 %v318_v54, %v315_v53  ;;  %v328_v10 = vrot.slane %v326_v49, 4  ;;  %v2971_v13 = vrot.slane %v2963_v17, 9 }
  0x47   : > { %v334_v12 = vrot.slane %v332_v55, 5  ;;  %3200 = vmatmul.mubr.msk.bf16.gmra.mrb[4].mxu1 %vm434_vm3, %v2833_v59  ;;  %v1294_v22 = vsel %vm3846_vm4, %v1289_v3, %v1293_v43  ;;  %v1593_v23 = vrot.slane %v1591_v62, 4  ;;  %v337_v37 = vshrl.u32 %v3995_v56, 16  ;;  %v4040_v55 = vld [vmem:[%s3807_s4 + $0x50] sm:$0x1] }
  0x48   : > { %v340_v28 = vshll.u32 %v3995_v56, 16  ;;  %v2950_v34 = vcombine.low %v1284_v0, %v1294_v22  ;;  %v320_v40 = vrot.slane %v319_v9, 4  ;;  %v329_v42 = vor.u32 %v328_v10, %v324_v26 }
  0x49   : > { %v1592_v45 = vsel %vm4001_vm7, %v2971_v13, %v1591_v62  ;;  %v1595_v43 = vsel %vm4001_vm7, %v1593_v23, %v1594_v63  ;;  %v339_v46 = vrot.slane %v337_v37, 4  ;;  %v346_v48 = vshll.u32 %v4006_v4, 16  ;;  %v4036_v62 = vld [vmem:[%s3807_s4 + $0x4c] sm:$0xf] }
  0x4a   : > { %v342_v47 = vrot.slane %v340_v28, 5  ;;  %3272 = vmatmul.mubr.msk.bf16.gmra.mrb[4].mxu0 %vm434_vm3, %v2950_v34  ;;  %v325_v49 = vsel %vm3846_vm4, %v320_v40, %v324_v26  ;;  %v330_v17 = vrot.slane %v329_v42, 4  ;;  %v2980_v15 = vcombine.low %v1592_v45, %v1595_v43  ;;  %v4058_v28 = vld [vmem:[%s3807_s4 + $0x54] sm:$0xf]  ;;  %v4069_v34 = vld [vmem:[%s4724_s1 + $0xe] sm:$0x3] }
  0x4b   : > { %v350_v51 = vshrl.u32 %v4006_v4, 16  ;;  %v348_v53 = vrot.slane %v346_v48, 5  ;;  %v356_v63 = vshll.u32 %v4009_v18, 16  ;;  %v2972_v54 = vrot.slane %v2964_v20, 9 }
  0x4c   : > { %v343_v16 = vor.u32 %v342_v47, %v339_v46  ;;  %v335_v59 = vsel %vm3846_vm4, %v330_v17, %v334_v12  ;;  %3285 = vmatprep.mubr.msk.bf16.mxu0 %vm434_vm3, %v2980_v15  ;;  %v1602_v3 = vsel %vm4001_vm7, %v3902_v35, %v1601_v33  ;;  %v361_v26 = vshrl.u32 %v4020_v30, 16  ;;  %v2965_v12 = vld [vmem:[%s3807_s4 + $0x24] sm:$0xe]  ;;  %v4074_v17 = vld [vmem:[%s3807_s4 + $0x58] sm:$0xf] }
  0x4d   : > { %v352_v0 = vrot.slane %v350_v51, 4  ;;  %v2834_v9 = vcombine.low %v325_v49, %v335_v59  ;;  %v358_v13 = vrot.slane %v356_v63, 5  ;;  %v1599_v20 = vsel %vm4001_vm7, %v2972_v54, %v1598_v25  ;;  %v4083_v54 = vld [vmem:[%s3807_s4 + $0x5c] sm:$0x1] }
  0x4e   : > { %v344_v10 = vrot.slane %v343_v16, 4  ;;  %v2981_v23 = vcombine.low %v1599_v20, %v1602_v3  ;;  %v363_v37 = vrot.slane %v361_v26, 4  ;;  %v364_v1 = vshll.u32 %v4020_v30, 16 }
  0x4f   : > { %v353_v22 = vor.u32 %v352_v0, %v348_v53  ;;  %3203 = vmatprep.mubr.msk.bf16.mxu1 %vm434_vm3, %v2834_v9  ;;  %v370_v35 = vshll.u32 %v4036_v62, 16  ;;  %v374_v60 = vshrl.u32 %v4036_v62, 16  ;;  %v380_v25 = vshll.u32 %v4040_v55, 16 }
  0x50   : > { %v349_v33 = vsel %vm3846_vm4, %v344_v10, %v348_v53  ;;  %v366_v42 = vrot.slane %v364_v1, 5  ;;  %v2973_v45 = vrot.slane %v2965_v12, 9  ;;  %v1605_v43 = vrot.slane %v3915_v52, 5  ;;  %v2966_v10 = vld [vmem:[%s3807_s4 + $0x30] sm:$0xe] }
  0x51   : > { %v354_v40 = vrot.slane %v353_v22, 4  ;;  %v372_v46 = vrot.slane %v370_v35, 5  ;;  %v376_v47 = vrot.slane %v374_v60, 4  ;;  %v382_v48 = vrot.slane %v380_v25, 5 }
  0x52   : > { %v1608_v49 = vrot.slane %v3927_v61, 5  ;;  %3286 = vmatmul.mubr.msk.bf16.vlgmr.msra.gmra.mrb[0].mxu0 %vm434_vm3, %v2981_v23  ;;  %v367_v51 = vor.u32 %v366_v42, %v363_v37  ;;  %v1606_v16 = vsel %vm4001_vm7, %v2973_v45, %v1605_v43  ;;  %v1607_v53 = vrot.slane %v1605_v43, 4  ;;  %v4104_v42 = vld [vmem:[%s3807_s4 + $0x40] sm:$0xf]  ;;  %v4107_v45 = vld [vmem:[%s3807_s4 + $0x44] sm:$0x1] }
  0x53   : > { %v359_v15 = vsel %vm3846_vm4, %v354_v40, %v358_v13  ;;  %3302 = vmatpush3.bf16.msra.mxu0 %v3858_v41  ;;  %v377_v52 = vor.u32 %v376_v47, %v372_v46  ;;  %v385_v61 = vshrl.u32 %v4058_v28, 16  ;;  %v388_v59 = vshll.u32 %v4058_v28, 16 }
  0x54   : > { %v2835_v63 = vcombine.low %v349_v33, %v359_v15  ;;  %v368_v0 = vrot.slane %v367_v51, 4  ;;  %v1609_v3 = vsel %vm4001_vm7, %v1607_v53, %v1608_v49  ;;  %v394_v26 = vshll.u32 %v4074_v17, 16  ;;  %3493 = vmatprep.subr.msk.bf16.mxu0 %vm459_vm0, %v4069_v34  ;;  %v2967_v33 = vld [vmem:[%s3807_s4 + $0x3c] sm:$0xe] }
  0x55   : > { %v398_v9 = vshrl.u32 %v4074_v17, 16  ;;  %v378_v41 = vrot.slane %v377_v52, 4  ;;  %v2982_v13 = vcombine.low %v1606_v16, %v1609_v3  ;;  %v387_v20 = vrot.slane %v385_v61, 4  ;;  %v2968_v3 = vld [vmem:[%s3807_s4 + $0x48] sm:$0xe] }
  0x56   : > { %3204 = vmatmul.mubr.msk.bf16.gmra.mrb[8].mxu1 %vm434_vm3, %v2835_v63  ;;  %v390_v12 = vrot.slane %v388_v59, 5  ;;  %v373_v22 = vsel %vm3846_vm4, %v368_v0, %v372_v46  ;;  %v396_v23 = vrot.slane %v394_v26, 5  ;;  %v404_v1 = vshll.u32 %v4083_v54, 16  ;;  %v4122_v59 = vld [vmem:[%s3807_s4 + $0x4c] sm:$0xf] }
  0x57   : > { %v400_v37 = vrot.slane %v398_v9, 4  ;;  %v383_v35 = vsel %vm3846_vm4, %v378_v41, %v382_v48  ;;  %3289 = vmatprep.mubr.msk.bf16.mxu0 %vm434_vm3, %v2982_v13  ;;  %v2974_v25 = vrot.slane %v2966_v10, 9  ;;  %v1612_v40 = vrot.slane %v3957_v50, 5  ;;  %v4125_v0 = vld [vmem:[%s3807_s4 + $0x50] sm:$0x1] }
  0x58   : > { %v391_v60 = vor.u32 %v390_v12, %v387_v20  ;;  %v2836_v43 = vcombine.low %v373_v22, %v383_v35  ;;  %v406_v47 = vrot.slane %v404_v1, 5  ;;  %v1615_v49 = vrot.slane %v3967_v58, 5  ;;  %v4133_v20 = vld [vmem:[%s3807_s4 + $0x58] sm:$0xf]  ;;  %v4136_v12 = vld [vmem:[%s3807_s4 + $0x5c] sm:$0x1] }
  0x59   : > { %v401_v46 = vor.u32 %v400_v37, %v396_v23  ;;  %v1613_v48 = vsel %vm4001_vm7, %v2974_v25, %v1612_v40  ;;  %v1614_v51 = vrot.slane %v1612_v40, 4  ;;  %v2975_v16 = vrot.slane %v2967_v33, 9  ;;  %4738 = vst [vmem:[#allocation5_spill] sm:$0xff] %v4136_v12  ;;  %v4146_v35 = vld [vmem:[%s3807_s4 + $0x64] sm:$0xf] }
  0x5a   : > { %v392_v15 = vrot.slane %v391_v60, 4  ;;  %3207 = vmatprep.mubr.msk.bf16.mxu1 %vm434_vm3, %v2836_v43  ;;  %v1619_v53 = vrot.slane %v4104_v42, 5  ;;  %v1622_v63 = vrot.slane %v4107_v45, 5  ;;  %v2846_v61 = vcombine.low %v3810_v6, %v3813_v7  ;;  %v2969_v6 = vld [vmem:[%s3807_s4 + $0x54] sm:$0xe]  ;;  %4739 = vst [vmem:[#allocation6_spill] sm:$0xff] %v4146_v35 }
  0x5b   : > { %v402_v50 = vrot.slane %v401_v46, 4  ;;  %v1616_v58 = vsel %vm4001_vm7, %v1614_v51, %v1615_v49  ;;  %v1626_v37 = vrot.slane %v4122_v59, 5  ;;  %v1629_v1 = vrot.slane %v4125_v0, 5  ;;  %v4149_v60 = vld [vmem:[%s3807_s4 + $0x68] sm:$0x1] }
  0x5c   : > { %v397_v52 = vsel %vm3846_vm4, %v392_v15, %v396_v23  ;;  %v2983_v9 = vcombine.low %v1613_v48, %v1616_v58  ;;  %v1620_v10 = vsel %vm4001_vm7, %v2975_v16, %v1619_v53  ;;  %v1621_v41 = vrot.slane %v1619_v53, 4  ;;  %4740 = vst [vmem:[#allocation7_spill] sm:$0xff] %v4149_v60 }
  0x5d   : > { %v407_v26 = vsel %vm3846_vm4, %v402_v50, %v406_v47  ;;  %v2976_v23 = vrot.slane %v2968_v3, 9  ;;  %v1628_v40 = vrot.slane %v1626_v37, 4  ;;  %v2977_v43 = vrot.slane %v2969_v6, 9  ;;  %v2970_v47 = vld [vmem:[%s3807_s4 + $0x60] sm:$0xe] }
  0x5e   : > { %v2837_v13 = vcombine.low %v397_v52, %v407_v26  ;;  %3290 = vmatmul.mubr.msk.bf16.gmra.mrb[4].mxu0 %vm434_vm3, %v2983_v9  ;;  %v1623_v22 = vsel %vm4001_vm7, %v1621_v41, %v1622_v63  ;;  %v1633_v46 = vrot.slane %v4133_v20, 5  ;;  %v760_v49 = vrot.slane %v3851_v36, 5  ;;  %v726_v3 = vld [vmem:[%s3807_s4 + $0x18] sm:$0xe] }
  0x5f   : > { %v2984_v33 = vcombine.low %v1620_v10, %v1623_v22  ;;  %v1627_v25 = vsel %vm4001_vm7, %v2976_v23, %v1626_v37  ;;  %v1636_v15 = vrot.slane %v4136_v12, 5  ;;  %v1630_v48 = vsel %vm4001_vm7, %v1628_v40, %v1629_v1  ;;  %v728_v1 = vld [vmem:[%s3807_s4 + $0x30] sm:$0xe] }
  0x60   : > { %3208 = vmatmul.mubr.msk.bf16.gmra.mrb[12].mxu1 %vm434_vm3, %v2837_v13  ;;  %v1634_v51 = vsel %vm4001_vm7, %v2977_v43, %v1633_v46  ;;  %v1635_v16 = vrot.slane %v1633_v46, 4  ;;  %v1640_v50 = vrot.slane %v4146_v35, 5  ;;  %v2847_v53 = vcombine.low %v3842_v31, %v3851_v36  ;;  %v727_v36 = vld [vmem:[%s3807_s4 + $0x24] sm:$0xe]  ;;  %v4455_v12 = vld [vmem:[%s3807_s4 + $0x70] sm:$0xf] }
  0x61   : > { %3213 = vmatprep.mubr.msk.bf16.mxu1 %vm434_vm3, %v2846_v61  ;;  %3293 = vmatprep.mubr.msk.bf16.mxu0 %vm434_vm3, %v2984_v33  ;;  %v2985_v63 = vcombine.low %v1627_v25, %v1630_v48  ;;  %v2978_v52 = vrot.slane %v2970_v47, 9  ;;  %v1643_v58 = vrot.slane %v4149_v60, 5  ;;  %v725_v61 = vld [vmem:[%s3807_s4 + $0xc] sm:$0xe]  ;;  %v763_v26 = vrot.slane %v3861_v44, 5 }
  0x62   : > { %v2848_v9 = vcombine.low %v3890_v21, %v3897_v27  ;;  %v1637_v10 = vsel %vm4001_vm7, %v1635_v16, %v1636_v15  ;;  %v1642_v41 = vrot.slane %v1640_v50, 4  ;;  %v858_v31 = vsel %vm459_vm0, %v3921_v57, 0  ;;  %v4181_v44 = vld [vmem:[%s4724_s1 + $0x6] sm:$0x3]  ;;  %v3572_v16 = vld [vmem:[%s3807_s4 + $0x18] sm:$0xff]  }
  0x63   : > { %v2986_v13 = vcombine.low %v1634_v51, %v1637_v10  ;;  %v2863_v6 = vrot.slane %v725_v61, 9  ;;  %v762_v22 = vrot.slane %v760_v49, 4  ;;  %v2864_v23 = vrot.slane %v726_v3, 9  ;;  %v4427_v60 = vld [vmem:[%s3807_s4 + $0x64] sm:$0xf] }
  0x64   : > { %v1641_v21 = vsel %vm4001_vm7, %v2978_v52, %v1640_v50  ;;  %v1644_v57 = vsel %vm4001_vm7, %v1642_v41, %v1643_v58  ;;  %v767_v37 = vrot.slane %v3897_v27, 5  ;;  %v770_v40 = vrot.slane %v3905_v38, 5  ;;  %4741 = vst [vmem:[#allocation8_spill] sm:$0xff] %v4427_v60 }
  0x65   : > { %v4194_v33 = vsel %vm4001_vm7, %v2863_v6, %v760_v49  ;;  %v4198_v25 = vsel %vm4001_vm7, %v762_v22, %v763_v26  ;;  %v2865_v43 = vrot.slane %v727_v36, 9  ;;  %v2987_v49 = vcombine.low %v1641_v21, %v1644_v57  ;;  %v3031_v26 = vld [vmem:[%s3807_s4 + $0x18] sm:$0xf]  ;;  %v3574_v57 = vld [vmem:[%s3807_s4 + $0x24] sm:$0xff]  }
  0x66   : > { %3294 = vmatmul.mubr.msk.bf16.gmra.mrb[8].mxu0 %vm434_vm3, %v2985_v63  ;;  %v2872_v46 = vcombine.low %v4194_v33, %v4198_v25  ;;  %v4205_v27 = vsel %vm4001_vm7, %v2864_v23, %v767_v37  ;;  %v769_v47 = vrot.slane %v767_v37, 4  ;;  %v774_v15 = vrot.slane %v3937_v19, 5 }
  0x67   : > { %3297 = vmatprep.mubr.msk.bf16.mxu0 %vm434_vm3, %v2986_v13  ;;  %v777_v48 = vrot.slane %v3947_v29, 5  ;;  %v2866_v38 = vrot.slane %v728_v1, 9  ;;  %v2849_v51 = vcombine.low %v3933_v11, %v3937_v19  ;;  %v784_v63 = vrot.slane %v3983_v39, 5  ;;  %v729_v19 = vld [vmem:[%s3807_s4 + $0x3c] sm:$0xe] }
  0x68   : > { %3214 = vmatmul.mubr.msk.bf16.vlgmr.msra.gmra.mrb[0].mxu1 %vm434_vm3, %v2847_v53  ;;  %v4216_v50 = vsel %vm4001_vm7, %v769_v47, %v770_v40  ;;  %v781_v53 = vrot.slane %v3978_v24, 5  ;;  %v2850_v52 = vcombine.low %v3972_v14, %v3978_v24  ;;  %v4226_v58 = vsel %vm4001_vm7, %v2865_v43, %v774_v15  ;;  %v724_v14 = vld [vmem:[%s3807_s4] sm:$0xe]  ;;  %v730_v1 = vld [vmem:[%s3807_s4 + $0x48] sm:$0xe] }
  0x69   : > { %3217 = vmatprep.mubr.msk.bf16.mxu1 %vm434_vm3, %v2848_v9  ;;  %3230 = vmatpush3.bf16.msra.mxu1 %v858_v31  ;;  %v2873_v29 = vcombine.low %v4205_v27, %v4216_v50  ;;  %v776_v11 = vrot.slane %v774_v15, 4  ;;  %v753_v61 = vrot.slane %v3813_v7, 5  ;;  %v2867_v10 = vrot.slane %v729_v19, 9  ;;  %v4254_v31 = vld [vmem:[%s3807_s4 + $0x1c] sm:$0xf] }
  0x6a   : > { %3488 = vmatprep.subr.msk.bf16.mxu1 %vm459_vm0, %v4181_v44  ;;  %v4232_v3 = vsel %vm4001_vm7, %v2866_v38, %v781_v53  ;;  %v783_v39 = vrot.slane %v781_v53, 4  ;;  %v756_v41 = vrot.slane %v3816_v8, 5  ;;  %v2862_v36 = vrot.slane %v724_v14, 9  ;;  %v4280_v38 = vld [vmem:[%s4724_s1 + $0x10] sm:$0x3] }
  0x6b   : > { %v4238_v24 = vsel %vm4001_vm7, %v776_v11, %v777_v48  ;;  %v755_v6 = vrot.slane %v753_v61, 4  ;;  %v788_v22 = vrot.slane %v4006_v4, 5  ;;  %v791_v23 = vrot.slane %v4009_v18, 5  ;;  %v4301_v14 = vld [vmem:[%s3807_s4 + $0x28] sm:$0xf] }
  0x6c   : > { %v4247_v9 = vsel %vm4001_vm7, %v783_v39, %v784_v63  ;;  %v2851_v21 = vcombine.low %v3995_v56, %v4006_v4  ;;  %v2038_v37 = vshrl.u32 %v3031_v26, 16  ;;  %v2041_v8 = vshll.u32 %v3031_v26, 16  ;;  %v3576_v4 = vld [vmem:[%s3807_s4 + $0x30] sm:$0xff]   ;;  %v3591_v27 = vld [vmem:[%s4724_s1 + $0x8] sm:$0x3] }
  0x6d   : > { %v2047_v40 = vshll.u32 %v4254_v31, 16  ;;  %v2051_v43 = vshrl.u32 %v4254_v31, 16  ;;  %v4266_v47 = vsel %vm4001_vm7, %v2867_v10, %v788_v22  ;;  %v2280_v18 = vsel %vm459_vm0, %v4069_v34, 0  ;;  %v4403_v50 = vld [vmem:[%s3807_s4 + $0x44] sm:$0x1] }
  0x6e   : > { %3298 = vmatmul.mubr.msk.bf16.gmra.mrb[12].mxu0 %vm434_vm3, %v2987_v49  ;;  %v790_v49 = vrot.slane %v788_v22, 4  ;;  %v2852_v56 = vcombine.low %v4020_v30, %v4036_v62  ;;  %v754_v15 = vsel %vm4001_vm7, %v2862_v36, %v753_v61  ;;  %v757_v48 = vsel %vm4001_vm7, %v755_v6, %v756_v41  ;;  %v4288_v30 = vld [vmem:[%s3807_s4 + $0x20] sm:$0x1]  ;;  %v3034_v61 = vld [vmem:[%s3807_s4 + $0x24] sm:$0xf] }
  0x6f   : > { %3303 = vmatprep.mubr.msk.bf16.mxu0 %vm434_vm3, %v3572_v16  ;;  %v2868_v34 = vrot.slane %v730_v1, 9  ;;  %v2040_v16 = vrot.slane %v2038_v37, 4  ;;  %v2043_v53 = vrot.slane %v2041_v8, 5  ;;  %v4294_v11 = vrot.slane %v2047_v40, 5  ;;  %v731_v6 = vld [vmem:[%s3807_s4 + $0x54] sm:$0xe] }
  0x70   : > { %3218 = vmatmul.mubr.msk.bf16.gmra.mrb[4].mxu1 %vm434_vm3, %v2849_v51  ;;  %v4284_v51 = vsel %vm4001_vm7, %v790_v49, %v791_v23  ;;  %v2053_v19 = vrot.slane %v2051_v43, 4  ;;  %v798_v39 = vrot.slane %v4040_v55, 5  ;;  %v2853_v10 = vcombine.low %v4058_v28, %v4074_v17  ;;  %v3037_v55 = vld [vmem:[%s3807_s4 + $0x30] sm:$0xf]  ;;  %v3578_v22 = vld [vmem:[%s3807_s4 + $0x3c] sm:$0xff]   ;;  %v3579_v1 = vld [vmem:[%s3807_s4 + $0x48] sm:$0xff]  }
  0x71   : > { %3221 = vmatprep.mubr.msk.bf16.mxu1 %vm434_vm3, %v2850_v52  ;;  %v795_v52 = vrot.slane %v4036_v62, 5  ;;  %v2871_v41 = vcombine.low %v754_v15, %v757_v48  ;;  %v2057_v36 = vshll.u32 %v4288_v30, 16  ;;  %v2044_v23 = vor.u32 %v2043_v53, %v2040_v16  ;;  %v4320_v8 = vld [vmem:[%s3807_s4 + $0x34] sm:$0xf]  ;;  %v3049_v7 = vld [vmem:[%s3807_s4 + $0x60] sm:$0xf] }
  0x72   : > { %v2054_v28 = vor.u32 %v2053_v19, %v4294_v11  ;;  %v2071_v40 = vshll.u32 %v4301_v14, 16  ;;  %v2075_v43 = vshrl.u32 %v4301_v14, 16  ;;  %v802_v15 = vrot.slane %v4074_v17, 5 }
  0x73   : > { %v4305_v62 = vsel %vm4001_vm7, %v2868_v34, %v795_v52  ;;  %v797_v26 = vrot.slane %v795_v52, 4  ;;  %v2095_v48 = vshll.u32 %v4320_v8, 16  ;;  %v2099_v34 = vshrl.u32 %v4320_v8, 16 }
  0x74   : > { %v805_v16 = vrot.slane %v4083_v54, 5  ;;  %v2045_v53 = vrot.slane %v2044_v23, 4  ;;  %v2059_v52 = vrot.slane %v2057_v36, 5  ;;  %v2055_v17 = vrot.slane %v2054_v28, 4  ;;  %v4343_v36 = vld [vmem:[%s3807_s4 + $0x2c] sm:$0x1] }
  0x75   : > { %v4317_v37 = vsel %vm4001_vm7, %v797_v26, %v798_v39  ;;  %v4339_v26 = vrot.slane %v2071_v40, 5  ;;  %v4350_v23 = vld [vmem:[%s3807_s4 + $0x38] sm:$0x1]  ;;  %v1060_v40 = vsel %vm459_vm0, %v4181_v44, 0 }
  0x76   : > { %3304 = vmatmul.mubr.msk.bf16.vlgmr.msra.gmra.mrb[0].mxu0 %vm434_vm3, %v3574_v57  ;;  %v2065_v57 = vshll.u32 %v3034_v61, 16  ;;  %v3580_v28 = vld [vmem:[%s3807_s4 + $0x54] sm:$0xff]   ;;  %v2105_v44 = vshll.u32 %v4350_v23, 16 }
  0x77   : > { %3320 = vmatpush3.bf16.msra.mxu0 %v2280_v18  ;;  %3307 = vmatprep.mubr.msk.bf16.mxu0 %vm434_vm3, %v3576_v4  ;;  %v2086_v18 = vshrl.u32 %v3037_v55, 16  ;;  %v2869_v4 = vrot.slane %v731_v6, 9 }
  0x78   : > { %3222 = vmatmul.mubr.msk.bf16.gmra.mrb[8].mxu1 %vm434_vm3, %v2851_v21  ;;  %3494 = vmatprep.subr.msk.bf16.mxu0 %vm459_vm0, %v4280_v38  ;;  %v2062_v21 = vshrl.u32 %v3034_v61, 16  ;;  %v804_v61 = vrot.slane %v802_v15, 4  ;;  %v2067_v54 = vrot.slane %v2065_v57, 5  ;;  %v2101_v57 = vrot.slane %v2099_v34, 4  ;;  %v3043_v34 = vld [vmem:[%s3807_s4 + $0x48] sm:$0xf] }
  0x79   : > { %3225 = vmatprep.mubr.msk.bf16.mxu1 %vm434_vm3, %v2852_v56  ;;  %v2089_v56 = vshll.u32 %v3037_v55, 16  ;;  %v4335_v19 = vsel %vm4001_vm7, %v2869_v4, %v802_v15  ;;  %v2077_v55 = vrot.slane %v2075_v43, 4  ;;  %v2088_v6 = vrot.slane %v2086_v18, 4  ;;  %v4361_v43 = vld [vmem:[%s3807_s4 + $0x40] sm:$0xf] }
  0x7a   : > { %v2064_v39 = vrot.slane %v2062_v21, 4  ;;  %v4352_v21 = vrot.slane %v2095_v48, 5  ;;  %v3581_v18 = vld [vmem:[%s3807_s4 + $0x60] sm:$0xff]   ;;  %v2060_v4 = vsel %vm3846_vm4, %v2055_v17, %v2059_v52  ;;  %v2081_v48 = vshll.u32 %v4343_v36, 16 }
  0x7b   : > { %v2134_v52 = vshrl.u32 %v3043_v34, 16  ;;  %v2137_v17 = vshll.u32 %v3043_v34, 16  ;;  %v2107_v33 = vrot.slane %v2105_v44, 5 }
  0x7c   : > { %v2068_v15 = vor.u32 %v2067_v54, %v2064_v39  ;;  %v2102_v63 = vor.u32 %v2101_v57, %v4352_v21  ;;  %v3046_v57 = vld [vmem:[%s3807_s4 + $0x54] sm:$0xf] }
  0x7d   : > { %v2161_v34 = vshll.u32 %v3046_v57, 16 }
  0x7e   : > { %3308 = vmatmul.mubr.msk.bf16.gmra.mrb[4].mxu0 %vm434_vm3, %v3578_v22  ;;  %v2091_v22 = vrot.slane %v2089_v56, 5  ;;  %v2050_v56 = vsel %vm3846_vm4, %v2045_v53, %v4294_v11  ;;  %v2119_v11 = vshll.u32 %v4361_v43, 16  ;;  %v2123_v53 = vshrl.u32 %v4361_v43, 16 }
  0x7f   : > { %3311 = vmatprep.mubr.msk.bf16.mxu0 %vm434_vm3, %v3579_v1  ;;  %v3056_v54 = vcombine.low %v2050_v56, %v2060_v4  ;;  %v2103_v56 = vrot.slane %v2102_v63, 4  ;;  %v4408_v63 = vld [vmem:[%s3807_s4 + $0x50] sm:$0x1] }
  0x80   : > { %3226 = vmatmul.mubr.msk.bf16.gmra.mrb[12].mxu1 %vm434_vm3, %v2853_v10  ;;  %v4347_v10 = vsel %vm4001_vm7, %v804_v61, %v805_v16  ;;  %v4372_v16 = vld [vmem:[%s3807_s4 + $0x4c] sm:$0xf]  ;;  %v2078_v61 = vor.u32 %v2077_v55, %v4339_v26  ;;  %v2092_v1 = vor.u32 %v2091_v22, %v2088_v6  ;;  %v2069_v55 = vrot.slane %v2068_v15, 4 }
  0x81   : > { %3231 = vmatprep.mubr.msk.bf16.mxu1 %vm434_vm3, %v2871_v41  ;;  %v3040_v41 = vld [vmem:[%s3807_s4 + $0x3c] sm:$0xf]  ;;  %v2143_v39 = vshll.u32 %v4372_v16, 16  ;;  %v2083_v6 = vrot.slane %v2081_v48, 5  ;;  %v2147_v22 = vshrl.u32 %v4372_v16, 16  ;;  %v4396_v15 = vrot.slane %v2119_v11, 5 }
  0x82   : > { %v2110_v49 = vshrl.u32 %v3040_v41, 16  ;;  %v2113_v13 = vshll.u32 %v3040_v41, 16  ;;  %v2079_v41 = vrot.slane %v2078_v61, 4  ;;  %v2125_v48 = vrot.slane %v2123_v53, 4 }
  0x83   : > { %v1329_v11 = vshll.u32 %v4122_v59, 16  ;;  %v2074_v53 = vsel %vm3846_vm4, %v2069_v55, %v4339_v26  ;;  %v2108_v26 = vsel %vm3846_vm4, %v2103_v56, %v2107_v33  ;;  %v4743_v33 = vcombine.low %v4232_v3, %v4247_v9  ;;  %v4446_v56 = vld [vmem:[%s3807_s4 + $0x5c] sm:$0x1] }
  0x84   : > { %v2112_v25 = vrot.slane %v2110_v49, 4  ;;  %v2115_v4 = vrot.slane %v2113_v13, 5  ;;  %v4405_v49 = vrot.slane %v2143_v39, 5  ;;  %v2149_v13 = vrot.slane %v2147_v22, 4 }
  0x86   : > { %3312 = vmatmul.mubr.msk.bf16.gmra.mrb[8].mxu0 %vm434_vm3, %v3580_v28  ;;  %v2093_v28 = vrot.slane %v2092_v1, 4  ;;  %v2139_v1 = vrot.slane %v2137_v17, 5  ;;  %v2534_v17 = vsel %vm459_vm0, %v4280_v38, 0  ;;  %v2116_v22 = vor.u32 %v2115_v4, %v2112_v25 }
  0x87   : > { %3315 = vmatprep.mubr.msk.bf16.mxu0 %vm434_vm3, %v3581_v18  ;;  %v3582_v18 = vld [vmem:[%s3807_s4 + $0x6c] sm:$0xff]   ;;  %v2153_v38 = vshll.u32 %v4408_v63, 16  ;;  %v2182_v4 = vshrl.u32 %v3049_v7, 16 }
  0x88   : > { %3232 = vmatmul.mubr.msk.bf16.vlgmr.msra.gmra.mrb[0].mxu1 %vm434_vm3, %v2872_v46  ;;  %v4393_v46 = vld [vmem:[%s3807_s4 + $0x58] sm:$0xf]  ;;  %v2098_v39 = vsel %vm3846_vm4, %v2093_v28, %v4352_v21  ;;  %v4742_v21 = vcombine.low %v4226_v58, %v4238_v24  ;;  %v2163_v28 = vrot.slane %v2161_v34, 5  ;;  %v2185_v58 = vshll.u32 %v3049_v7, 16 }
  0x89   : > { %3235 = vmatprep.mubr.msk.bf16.mxu1 %vm434_vm3, %v2873_v29  ;;  %3248 = vmatpush3.bf16.msra.mxu1 %v1060_v40  ;;  %v2136_v29 = vrot.slane %v2134_v52, 4  ;;  %v2158_v40 = vshrl.u32 %v3046_v57, 16  ;;  %v2167_v61 = vshll.u32 %v4393_v46, 16  ;;  %v2171_v44 = vshrl.u32 %v4393_v46, 16 }
  0x8a   : > { %3490 = vmatprep.subr.msk.bf16.mxu1 %vm459_vm0, %v3591_v27  ;;  %v2084_v52 = vsel %vm3846_vm4, %v2079_v41, %v2083_v6  ;;  %v2126_v57 = vor.u32 %v2125_v48, %v4396_v15  ;;  %v2129_v27 = vshll.u32 %v4403_v50, 16  ;;  %v2150_v41 = vor.u32 %v2149_v13, %v4405_v49 }
  0x8b   : > { %v2140_v55 = vor.u32 %v2139_v1, %v2136_v29  ;;  %v2160_v6 = vrot.slane %v2158_v40, 4  ;;  %v4439_v25 = vrot.slane %v2167_v61, 5  ;;  %v2191_v24 = vshll.u32 %v4427_v60, 16 }
  0x8c   : > { %v1333_v48 = vshrl.u32 %v4122_v59, 16  ;;  %v2117_v29 = vrot.slane %v2116_v22, 4  ;;  %v2127_v1 = vrot.slane %v2126_v57, 4  ;;  %v2131_v40 = vrot.slane %v2129_v27, 5  ;;  %v4467_v27 = vld [vmem:[%s3807_s4 + $0x68] sm:$0x1] }
  0x8d   : > { %v3057_v13 = vcombine.low %v2074_v53, %v2084_v52  ;;  %v3058_v34 = vcombine.low %v2098_v39, %v2108_v26  ;;  %v2141_v3 = vrot.slane %v2140_v55, 4  ;;  %v2155_v9 = vrot.slane %v2153_v38, 5 }
  0x8e   : > { %3316 = vmatmul.mubr.msk.bf16.gmra.mrb[12].mxu0 %vm434_vm3, %v3582_v18  ;;  %v2173_v18 = vrot.slane %v2171_v44, 4  ;;  %v2151_v61 = vrot.slane %v2150_v41, 4  ;;  %v2164_v44 = vor.u32 %v2163_v28, %v2160_v6  ;;  %v2177_v7 = vshll.u32 %v4446_v56, 16 }
  0x8f   : > { %3321 = vmatprep.mubr.msk.bf16.mxu0 %vm434_vm3, %v3056_v54  ;;  %v2195_v54 = vshrl.u32 %v4427_v60, 16  ;;  %v2184_v35 = vrot.slane %v2182_v4, 4  ;;  %v2187_v60 = vrot.slane %v2185_v58, 5  ;;  %v4457_v59 = vrot.slane %v2191_v24, 5 }
  0x90   : > { %3236 = vmatmul.mubr.msk.bf16.gmra.mrb[4].mxu1 %vm434_vm3, %v4742_v21  ;;  %v2174_v21 = vor.u32 %v2173_v18, %v4439_v25  ;;  %v4459_v57 = vrot.slane %v1329_v11, 5  ;;  %v1335_v53 = vrot.slane %v1333_v48, 4  ;;  %v2122_v52 = vsel %vm3846_vm4, %v2117_v29, %v4396_v15 }
  0x91   : > { %3239 = vmatprep.mubr.msk.bf16.mxu1 %vm434_vm3, %v4743_v33  ;;  %v3052_v33 = vld [vmem:[%s3807_s4 + $0x6c] sm:$0xf]  ;;  %v2197_v22 = vrot.slane %v2195_v54, 4  ;;  %v2132_v39 = vsel %vm3846_vm4, %v2127_v1, %v2131_v40  ;;  %v2215_v38 = vshll.u32 %v4455_v12, 16  ;;  %v2219_v6 = vshrl.u32 %v4455_v12, 16 }
  0x92   : > { %v2206_v26 = vshrl.u32 %v3052_v33, 16  ;;  %v2209_v55 = vshll.u32 %v3052_v33, 16  ;;  %v4744_v11 = vcombine.low %v4266_v47, %v4284_v51  ;;  %v2146_v15 = vsel %vm3846_vm4, %v2141_v3, %v4405_v49  ;;  %v3583_v40 = vld [vmem:[%s3807_s4 + $0xc] sm:$0xff]  }
  0x93   : > { %v2156_v41 = vsel %vm3846_vm4, %v2151_v61, %v2155_v9  ;;  %v2165_v28 = vrot.slane %v2164_v44, 4  ;;  %v2179_v18 = vrot.slane %v2177_v7, 5  ;;  %v4745_v4 = vcombine.low %v4305_v62, %v4317_v37 }
  0x94   : > { %v2175_v47 = vrot.slane %v2174_v21, 4  ;;  %v2188_v51 = vor.u32 %v2187_v60, %v2184_v35  ;;  %v2201_v49 = vshll.u32 %v4467_v27, 16  ;;  %v1336_v58 = vor.u32 %v1335_v53, %v4459_v57  ;;  %v4496_v60 = vld [vmem:[%s3807_s4 + $0x74] sm:$0x1]  ;;  %v2937_v21 = vld [vmem:[%s3807_s4 + $0x48] sm:$0xf] }
  0x95   : > { %v1339_v24 = vshll.u32 %v4125_v0, 16  ;;  %v3059_v54 = vcombine.low %v2122_v52, %v2132_v39  ;;  %v2208_v48 = vrot.slane %v2206_v26, 4  ;;  %v2211_v62 = vrot.slane %v2209_v55, 5 }
  0x96   : > { %3322 = vmatmul.mubr.msk.bf16.vlgmr.msra.gmra.mrb[0].mxu0 %vm434_vm3, %v3057_v13  ;;  %v4490_v37 = vrot.slane %v2215_v38, 5  ;;  %v2221_v29 = vrot.slane %v2219_v6, 4  ;;  %v3060_v1 = vcombine.low %v2146_v15, %v2156_v41  ;;  %v2170_v35 = vsel %vm3846_vm4, %v2165_v28, %v4439_v25 }
  0x97   : > { %3338 = vmatpush3.bf16.msra.mxu0 %v2534_v17  ;;  %3325 = vmatprep.mubr.msk.bf16.mxu0 %vm434_vm3, %v3058_v34  ;;  %v2198_v17 = vor.u32 %v2197_v22, %v4457_v59  ;;  %v2180_v13 = vsel %vm3846_vm4, %v2175_v47, %v2179_v18  ;;  %v2189_v0 = vrot.slane %v2188_v51, 4  ;;  %v2203_v3 = vrot.slane %v2201_v49, 5  ;;  %v3072_v22 = vld [vmem:[%s3807_s4 + $0x18] sm:$0xe]  ;;  %v3585_v51 = vld [vmem:[%s3807_s4 + $0x24] sm:$0xff]  }
  0x98   : > { %3240 = vmatmul.mubr.msk.bf16.gmra.mrb[8].mxu1 %vm434_vm3, %v4744_v11  ;;  %v1337_v9 = vrot.slane %v1336_v58, 4  ;;  %v1341_v61 = vrot.slane %v1339_v24, 5  ;;  %v2429_v44 = vrot.slane %v4254_v31, 5  ;;  %v2212_v7 = vor.u32 %v2211_v62, %v2208_v48  ;;  %v3074_v62 = vld [vmem:[%s3807_s4 + $0x30] sm:$0xe] }
  0x99   : > { %3243 = vmatprep.mubr.msk.bf16.mxu1 %vm434_vm3, %v4745_v4  ;;  %v2199_v34 = vrot.slane %v2198_v17, 4  ;;  %v2222_v33 = vor.u32 %v2221_v29, %v4490_v37  ;;  %v2225_v25 = vshll.u32 %v4496_v60, 16  ;;  %v4746_v53 = vcombine.low %v4335_v19, %v4347_v10  ;;  %v2934_v4 = vld [vmem:[%s3807_s4 + $0x3c] sm:$0xf] }
  0x9a   : > { %v3061_v52 = vcombine.low %v2170_v35, %v2180_v13  ;;  %v2194_v31 = vsel %vm3846_vm4, %v2189_v0, %v4457_v59  ;;  %v1320_v26 = vshrl.u32 %v2937_v21, 16  ;;  %v1323_v55 = vshll.u32 %v2937_v21, 16  ;;  %v3584_v59 = vld [vmem:[%s3807_s4 + $0x18] sm:$0xff]  }
  0x9b   : > { %v2204_v39 = vsel %vm3846_vm4, %v2199_v34, %v2203_v3  ;;  %v3080_v19 = vrot.slane %v3072_v22, 9  ;;  %v2431_v10 = vrot.slane %v2429_v44, 4  ;;  %v2432_v38 = vrot.slane %v4288_v30, 5  ;;  %v3073_v30 = vld [vmem:[%s3807_s4 + $0x24] sm:$0xe]  ;;  %v3587_v22 = vld [vmem:[%s3807_s4 + $0x3c] sm:$0xff]  }
  0x9c   : > { %v1342_v6 = vsel %vm3846_vm4, %v1337_v9, %v1341_v61  ;;  %v2213_v11 = vrot.slane %v2212_v7, 4  ;;  %v2223_v15 = vrot.slane %v2222_v33, 4  ;;  %v2227_v41 = vrot.slane %v2225_v25, 5 }
  0x9d   : > { %v1322_v28 = vrot.slane %v1320_v26, 4  ;;  %v3062_v18 = vcombine.low %v2194_v31, %v2204_v39  ;;  %v1325_v47 = vrot.slane %v1323_v55, 5  ;;  %v2430_v17 = vsel %vm4001_vm7, %v3080_v19, %v2429_v44  ;;  %v2940_v26 = vld [vmem:[%s3807_s4 + $0x54] sm:$0xf] }
  0x9e   : > { %3326 = vmatmul.mubr.msk.bf16.gmra.mrb[4].mxu0 %vm434_vm3, %v3059_v54  ;;  %v2433_v49 = vsel %vm4001_vm7, %v2431_v10, %v2432_v38  ;;  %v2436_v58 = vrot.slane %v4301_v14, 5  ;;  %v2218_v54 = vsel %vm3846_vm4, %v2213_v11, %v4490_v37  ;;  %v2228_v48 = vsel %vm3846_vm4, %v2223_v15, %v2227_v41  ;;  %v3076_v38 = vld [vmem:[%s3807_s4 + $0x48] sm:$0xe] }
  0x9f   : > { %3329 = vmatprep.mubr.msk.bf16.mxu0 %vm434_vm3, %v3060_v1  ;;  %v1326_v24 = vor.u32 %v1325_v47, %v1322_v28  ;;  %v2443_v29 = vrot.slane %v4320_v8, 5  ;;  %v1296_v1 = vshrl.u32 %v2934_v4, 16  ;;  %v1299_v35 = vshll.u32 %v2934_v4, 16 }
  0xa0   : > { %3244 = vmatmul.mubr.msk.bf16.gmra.mrb[12].mxu1 %vm434_vm3, %v4746_v53  ;;  %v1305_v14 = vshll.u32 %v4104_v42, 16  ;;  %v3081_v37 = vrot.slane %v3073_v30, 9  ;;  %v2439_v8 = vrot.slane %v4343_v36, 5  ;;  %v3089_v0 = vcombine.low %v2430_v17, %v2433_v49  ;;  %v3588_v17 = vld [vmem:[%s3807_s4 + $0x48] sm:$0xff]  }
  0xa1   : > { %3249 = vmatprep.mubr.msk.bf16.mxu1 %vm434_vm3, %v3583_v40  ;;  %v1309_v40 = vshrl.u32 %v4104_v42, 16  ;;  %v1327_v13 = vrot.slane %v1326_v24, 4  ;;  %v2438_v34 = vrot.slane %v2436_v58, 4  ;;  %v3082_v3 = vrot.slane %v3074_v62, 9  ;;  %v3589_v24 = vld [vmem:[%s3807_s4 + $0x54] sm:$0xff]  }
  0xa2   : > { %v3063_v61 = vcombine.low %v2218_v54, %v2228_v48  ;;  %v2445_v44 = vrot.slane %v2443_v29, 4  ;;  %v2446_v42 = vrot.slane %v4350_v23, 5  ;;  %v1298_v7 = vrot.slane %v1296_v1, 4 }
  0xa3   : > { %v1332_v9 = vsel %vm3846_vm4, %v1327_v13, %v4459_v57  ;;  %v1301_v33 = vrot.slane %v1299_v35, 5  ;;  %v4552_v25 = vrot.slane %v1305_v14, 5  ;;  %v1311_v36 = vrot.slane %v1309_v40, 4 }
  0xa4   : > { %v4549_v21 = vcombine.low %v1332_v9, %v1342_v6  ;;  %v2437_v53 = vsel %vm4001_vm7, %v3081_v37, %v2436_v58  ;;  %v2440_v57 = vsel %vm4001_vm7, %v2438_v34, %v2439_v8  ;;  %v2444_v23 = vsel %vm4001_vm7, %v3082_v3, %v2443_v29  ;;  %v2943_v29 = vld [vmem:[%s3807_s4 + $0x60] sm:$0xf]  ;;  %v3077_v37 = vld [vmem:[%s3807_s4 + $0x54] sm:$0xe]  ;;  %v4747_v8 = vld [vmem:[#allocation8_spill] sm:$0xff] }
  0xa5   : > { %v2450_v31 = vrot.slane %v4361_v43, 5  ;;  %v1315_v39 = vshll.u32 %v4107_v45, 16  ;;  %v2447_v55 = vsel %vm4001_vm7, %v2445_v44, %v2446_v42  ;;  %v1302_v19 = vor.u32 %v1301_v33, %v1298_v7  ;;  %v4748_v9 = vld [vmem:[#allocation6_spill] sm:$0xff]  ;;  %v4749_v33 = vld [vmem:[#allocation5_spill] sm:$0xff] }
  0xa6   : > { %3330 = vmatmul.mubr.msk.bf16.gmra.mrb[8].mxu0 %vm434_vm3, %v3061_v52  ;;  %v3075_v52 = vld [vmem:[%s3807_s4 + $0x3c] sm:$0xe]  ;;  %v1312_v10 = vor.u32 %v1311_v36, %v4552_v25  ;;  %v2457_v6 = vrot.slane %v4372_v16, 5  ;;  %v3090_v43 = vcombine.low %v2437_v53, %v2440_v57  ;;  %v2453_v11 = vrot.slane %v4403_v50, 5 }
  0xa7   : > { %3333 = vmatprep.mubr.msk.bf16.mxu0 %vm434_vm3, %v3062_v18  ;;  %v3083_v45 = vrot.slane %v3075_v52, 9  ;;  %v1344_v15 = vshrl.u32 %v2940_v26, 16  ;;  %v1347_v41 = vshll.u32 %v2940_v26, 16  ;;  %v1353_v28 = vshll.u32 %v4133_v20, 16  ;;  %v3590_v52 = vld [vmem:[%s3807_s4 + $0x60] sm:$0xff]  }
  0xa8   : > { %3250 = vmatmul.mubr.msk.bf16.vlgmr.msra.gmra.mrb[0].mxu1 %vm434_vm3, %v3584_v59  ;;  %v1357_v59 = vshrl.u32 %v4133_v20, 16  ;;  %v3091_v18 = vcombine.low %v2444_v23, %v2447_v55  ;;  %v2452_v4 = vrot.slane %v2450_v31, 4  ;;  %v1317_v47 = vrot.slane %v1315_v39, 5 }
  0xa9   : > { %3253 = vmatprep.mubr.msk.bf16.mxu1 %vm434_vm3, %v3585_v51  ;;  %3356 = vmatpush3.bf16.msra.mxu1 %v3790_v2  ;;  %v3586_v2 = vld [vmem:[%s3807_s4 + $0x30] sm:$0xff]   ;;  %v3084_v51 = vrot.slane %v3076_v38, 9  ;;  %v1303_v16 = vrot.slane %v1302_v19, 4  ;;  %v1313_v49 = vrot.slane %v1312_v10, 4  ;;  %v2459_v30 = vrot.slane %v2457_v6, 4 }
  0xaa   : > { %v2460_v58 = vrot.slane %v4408_v63, 5  ;;  %v1346_v50 = vrot.slane %v1344_v15, 4  ;;  %v1349_v54 = vrot.slane %v1347_v41, 5  ;;  %v1355_v48 = vrot.slane %v1353_v28, 5 }
  0xab   : > { %v1359_v62 = vrot.slane %v1357_v59, 4  ;;  %v2451_v20 = vsel %vm4001_vm7, %v3083_v45, %v2450_v31  ;;  %v2454_v1 = vsel %vm4001_vm7, %v2452_v4, %v2453_v11  ;;  %v2458_v35 = vsel %vm4001_vm7, %v3084_v51, %v2457_v6 }
  0xac   : > { %v2464_v63 = vrot.slane %v4393_v46, 5  ;;  %v1308_v14 = vsel %vm3846_vm4, %v1303_v16, %v4552_v25  ;;  %v1318_v40 = vsel %vm3846_vm4, %v1313_v49, %v1317_v47  ;;  %v2461_v13 = vsel %vm4001_vm7, %v2459_v30, %v2460_v58  ;;  %v3078_v46 = vld [vmem:[%s3807_s4 + $0x60] sm:$0xe]  ;;  %v3079_v47 = vld [vmem:[%s3807_s4 + $0x6c] sm:$0xe] }
  0xad   : > { %v1368_v34 = vshrl.u32 %v2943_v29, 16  ;;  %v1371_v3 = vshll.u32 %v2943_v29, 16  ;;  %v1381_v44 = vshrl.u32 %v4748_v9, 16  ;;  %v3092_v42 = vcombine.low %v2451_v20, %v2454_v1 }
  0xae   : > { %3334 = vmatmul.mubr.msk.bf16.gmra.mrb[12].mxu0 %vm434_vm3, %v3063_v61  ;;  %v1377_v61 = vshll.u32 %v4748_v9, 16  ;;  %v1360_v7 = vor.u32 %v1359_v62, %v1355_v48  ;;  %v1363_v25 = vshll.u32 %v4749_v33, 16  ;;  %v3093_v36 = vcombine.low %v2458_v35, %v2461_v13 }
  0xaf   : > { %3339 = vmatprep.mubr.msk.bf16.mxu0 %vm434_vm3, %v3089_v0  ;;  %v2471_v0 = vrot.slane %v4747_v8, 5  ;;  %v2466_v53 = vrot.slane %v2464_v63, 4  ;;  %v2467_v57 = vrot.slane %v4446_v56, 5  ;;  %v2951_v23 = vcombine.low %v1308_v14, %v1318_v40 }
  0xb0   : > { %3254 = vmatmul.mubr.msk.bf16.gmra.mrb[4].mxu1 %vm434_vm3, %v3586_v2  ;;  %v1350_v2 = vor.u32 %v1349_v54, %v1346_v50  ;;  %v3086_v31 = vrot.slane %v3078_v46, 9  ;;  %v2474_v26 = vrot.slane %v4467_v27, 5  ;;  %v1370_v55 = vrot.slane %v1368_v34, 4 }
  0xb1   : > { %3257 = vmatprep.mubr.msk.bf16.mxu1 %vm434_vm3, %v3587_v22  ;;  %v3085_v22 = vrot.slane %v3077_v37, 9  ;;  %v2473_v39 = vrot.slane %v2471_v0, 4  ;;  %v1373_v19 = vrot.slane %v1371_v3, 5  ;;  %v1379_v10 = vrot.slane %v1377_v61, 5 }
  0xb2   : > { %v1383_v38 = vrot.slane %v1381_v44, 4  ;;  %v1351_v6 = vrot.slane %v1350_v2, 4  ;;  %v1365_v45 = vrot.slane %v1363_v25, 5  ;;  %v2468_v27 = vsel %vm4001_vm7, %v2466_v53, %v2467_v57 }
  0xb3   : > { %v2465_v56 = vsel %vm4001_vm7, %v3085_v22, %v2464_v63  ;;  %v2472_v11 = vsel %vm4001_vm7, %v3086_v31, %v2471_v0  ;;  %v2478_v15 = vrot.slane %v4455_v12, 5  ;;  %v2475_v41 = vsel %vm4001_vm7, %v2473_v39, %v2474_v26 }
  0xb4   : > { %v1374_v28 = vor.u32 %v1373_v19, %v1370_v55  ;;  %v1384_v59 = vor.u32 %v1383_v38, %v1379_v10  ;;  %v1356_v51 = vsel %vm3846_vm4, %v1351_v6, %v1355_v48  ;;  %v3094_v16 = vcombine.low %v2465_v56, %v2468_v27 }
  0xb5   : > { %v3095_v49 = vcombine.low %v2472_v11, %v2475_v41  ;;  %v3087_v30 = vrot.slane %v3079_v47, 9  ;;  %v2480_v12 = vrot.slane %v2478_v15, 4  ;;  %v2481_v58 = vrot.slane %v4496_v60, 5 }
  0xb6   : > { %3340 = vmatmul.mubr.msk.bf16.vlgmr.msra.gmra.mrb[0].mxu0 %vm434_vm3, %v3090_v43  ;;  %v1361_v43 = vrot.slane %v1360_v7, 4  ;;  %v1375_v50 = vrot.slane %v1374_v28, 4  ;;  %v1385_v54 = vrot.slane %v1384_v59, 4 }
  0xb7   : > { %3343 = vmatprep.mubr.msk.bf16.mxu0 %vm434_vm3, %v3091_v18  ;;  %v4750_v18 = vld [vmem:[#allocation7_spill] sm:$0xff]  ;;  %v2479_v48 = vsel %vm4001_vm7, %v3087_v30, %v2478_v15  ;;  %v2482_v29 = vsel %vm4001_vm7, %v2480_v12, %v2481_v58 }
  0xb8   : > { %3258 = vmatmul.mubr.msk.bf16.gmra.mrb[8].mxu1 %vm434_vm3, %v3588_v17  ;;  %v1387_v4 = vshll.u32 %v4750_v18, 16  ;;  %v1366_v17 = vsel %vm3846_vm4, %v1361_v43, %v1365_v45  ;;  %v1380_v60 = vsel %vm3846_vm4, %v1375_v50, %v1379_v10  ;;  %v3096_v1 = vcombine.low %v2479_v48, %v2482_v29 }
  0xb9   : > { %3261 = vmatprep.mubr.msk.bf16.mxu1 %vm434_vm3, %v3589_v24  ;;  %v2953_v24 = vcombine.low %v1356_v51, %v1366_v17 }
  0xba   : > { %v1389_v62 = vrot.slane %v1387_v4, 5 }
  0xbc   : > { %v1390_v20 = vsel %vm3846_vm4, %v1385_v54, %v1389_v62 }
  0xbd   : > { %v2954_v35 = vcombine.low %v1380_v60, %v1390_v20 }
  0xbe   : > { %3344 = vmatmul.mubr.msk.bf16.gmra.mrb[4].mxu0 %vm434_vm3, %v3092_v42 }
  0xbf   : > { %3347 = vmatprep.mubr.msk.bf16.mxu0 %vm434_vm3, %v3093_v36 }
  0xc0   : > { %3262 = vmatmul.mubr.msk.bf16.gmra.mrb[12].mxu1 %vm434_vm3, %v3590_v52 }
  0xc1   : > { %3275 = vmatprep.mubr.msk.bf16.mxu1 %vm434_vm3, %v2951_v23 }
  0xc6   : > { %3348 = vmatmul.mubr.msk.bf16.gmra.mrb[8].mxu0 %vm434_vm3, %v3094_v16 }
  0xc7   : > { %3351 = vmatprep.mubr.msk.bf16.mxu0 %vm434_vm3, %v3095_v49 }
  0xc8   : > { %3276 = vmatmul.mubr.msk.bf16.vlgmr.msra.gmra.mrb[8].mxu1 %vm434_vm3, %v4549_v21 }
  0xc9   : > { %3279 = vmatprep.mubr.msk.bf16.mxu1 %vm434_vm3, %v2953_v24 }
  0xce   : > { %3352 = vmatmul.mubr.msk.bf16.gmra.mrb[12].mxu0 %vm434_vm3, %v3096_v1 }
  0xd0   : > { %3280 = vmatmul.mubr.msk.bf16.gmra.mrb[12].mxu1 %vm434_vm3, %v2954_v35 }
 0x17b   : > { %v3251_v21 = vpop.f32.mrb[0].mxu1 }
 0x17c   : > { %v1096_v63 = vpop.f32.mrb[1].mxu1 }
 0x17d   : > { %v3252_v14 = vpop.f32.mrb[2].mxu1 }
 0x17e   : > { %v1099_v40 = vpop.f32.mrb[3].mxu1 }
 0x183   : > { %v3255_v5 = vpop.f32.mrb[4].mxu1 }
 0x184   : > { %v1112_v13 = vpop.f32.mrb[5].mxu1 }
 0x185   : > { %v3256_v37 = vpop.f32.mrb[6].mxu1 }
 0x186   : > { %v1115_v8 = vpop.f32.mrb[7].mxu1 }
 0x189   : > { %v3341_v0 = vpop.f32.mrb[0].mxu0 }
 0x18a   : > { %v3357_v46 = vadd.f32 %v3341_v0, %v3251_v21  ;;  %v2570_v34 = vpop.f32.mrb[1].mxu0 }
 0x18b   : > { %v3358_v3 = vadd.f32 %v2570_v34, %v1096_v63  ;;  %v3342_v9 = vpop.f32.mrb[2].mxu0 }
 0x18c   : > { %v3359_v61 = vadd.f32 %v3342_v9, %v3252_v14  ;;  %v2573_v44 = vpop.f32.mrb[3].mxu0  ;;  %v2658_v23 = vadd.f32 %v3357_v46, %v4646_v32 }
 0x18d   : > { %v3360_v42 = vadd.f32 %v2573_v44, %v1099_v40  ;;  %v2656_v2 = vadd.f32 %v3358_v3, %v4646_v32 }
 0x18e   : > { %v2674_v55 = vmax.f32 %v2658_v23, 0.0  ;;  %v2659_v19 = vadd.f32 %v3359_v61, %v4646_v32 }
 0x18f   : > { %v2672_v7 = vmax.f32 %v2656_v2, 0.0  ;;  %v2657_v33 = vadd.f32 %v3360_v42, %v4646_v32 }
 0x190   : > { %v2675_v27 = vmax.f32 %v2659_v19, 0.0 }
 0x191   : > { %v3345_v25 = vpop.f32.mrb[4].mxu0  ;;  %2688 = vxpose.xlu0.b32.start [1/16] (narrow) %v2672_v7, 8  ;;  %v2673_v52 = vmax.f32 %v2657_v33, 0.0 }
 0x192   : > { %v3361_v36 = vadd.f32 %v3345_v25, %v3255_v5  ;;  %v2586_v22 = vpop.f32.mrb[5].mxu0 }
 0x193   : > { %v3362_v53 = vadd.f32 %v2586_v22, %v1112_v13  ;;  %v3346_v57 = vpop.f32.mrb[6].mxu0 }
 0x194   : > { %v3363_v31 = vadd.f32 %v3346_v57, %v3256_v37  ;;  %v2589_v39 = vpop.f32.mrb[7].mxu0  ;;  %v2662_v50 = vadd.f32 %v3361_v36, %v4646_v32 }
 0x195   : > { %v3364_v26 = vadd.f32 %v2589_v39, %v1115_v8  ;;  %2689 = vxpose.xlu0.b32.cont [2/16] (narrow) %v2673_v52, 8  ;;  %v2660_v11 = vadd.f32 %v3362_v53, %v4646_v32 }
 0x196   : > { %v2678_v1 = vmax.f32 %v2662_v50, 0.0  ;;  %v2663_v35 = vadd.f32 %v3363_v31, %v4646_v32 }
 0x197   : > { %v2676_v47 = vmax.f32 %v2660_v11, 0.0  ;;  %v2661_v51 = vadd.f32 %v3364_v26, %v4646_v32 }
 0x198   : > { %v2679_v21 = vmax.f32 %v2663_v35, 0.0 }
 0x199   : > { %v3349_v10 = vpop.f32.mrb[8].mxu0  ;;  %2690 = vxpose.xlu0.b32.cont [3/16] (narrow) %v2674_v55, 8  ;;  %v2677_v24 = vmax.f32 %v2661_v51, 0.0 }
 0x19a   : > { %v2602_v6 = vpop.f32.mrb[9].mxu0 }
 0x19b   : > { %v3277_v38 = vpop.f32.mrb[8].mxu1  ;;  %v3350_v56 = vpop.f32.mrb[10].mxu0 }
 0x19c   : > { %v3365_v43 = vadd.f32 %v3349_v10, %v3277_v38  ;;  %v1510_v45 = vpop.f32.mrb[9].mxu1  ;;  %v2605_v28 = vpop.f32.mrb[11].mxu0 }
 0x19d   : > { %v3366_v15 = vadd.f32 %v2602_v6, %v1510_v45  ;;  %v3278_v41 = vpop.f32.mrb[10].mxu1  ;;  %2691 = vxpose.xlu0.b32.cont [4/16] (narrow) %v2675_v27, 8 }
 0x19e   : > { %v3367_v59 = vadd.f32 %v3350_v56, %v3278_v41  ;;  %v1513_v18 = vpop.f32.mrb[11].mxu1  ;;  %v2666_v13 = vadd.f32 %v3365_v43, %v4646_v32 }
 0x19f   : > { %v3368_v4 = vadd.f32 %v2605_v28, %v1513_v18  ;;  %v2664_v63 = vadd.f32 %v3366_v15, %v4646_v32 }
 0x1a0   : > { %v2682_v37 = vmax.f32 %v2666_v13, 0.0  ;;  %v2667_v8 = vadd.f32 %v3367_v59, %v4646_v32 }
 0x1a1   : > { %v3353_v17 = vpop.f32.mrb[12].mxu0  ;;  %2692 = vxpose.xlu0.b32.cont [5/16] (narrow) %v2676_v47, 8  ;;  %v2680_v14 = vmax.f32 %v2664_v63, 0.0  ;;  %v2665_v40 = vadd.f32 %v3368_v4, %v4646_v32 }
 0x1a2   : > { %v2618_v49 = vpop.f32.mrb[13].mxu0  ;;  %v2683_v0 = vmax.f32 %v2667_v8, 0.0 }
 0x1a3   : > { %v3281_v16 = vpop.f32.mrb[12].mxu1  ;;  %v3354_v58 = vpop.f32.mrb[14].mxu0  ;;  %v2681_v5 = vmax.f32 %v2665_v40, 0.0 }
 0x1a4   : > { %v3369_v30 = vadd.f32 %v3353_v17, %v3281_v16  ;;  %v1526_v12 = vpop.f32.mrb[13].mxu1  ;;  %v2621_v48 = vpop.f32.mrb[15].mxu0 }
 0x1a5   : > { %v3370_v54 = vadd.f32 %v2618_v49, %v1526_v12  ;;  %v3282_v62 = vpop.f32.mrb[14].mxu1  ;;  %2693 = vxpose.xlu0.b32.cont [6/16] (narrow) %v2677_v24, 8 }
 0x1a6   : > { %v3371_v29 = vadd.f32 %v3354_v58, %v3282_v62  ;;  %v1529_v60 = vpop.f32.mrb[15].mxu1  ;;  %v2670_v61 = vadd.f32 %v3369_v30, %v4646_v32 }
 0x1a7   : > { %v3372_v20 = vadd.f32 %v2621_v48, %v1529_v60  ;;  %v2668_v46 = vadd.f32 %v3370_v54, %v4646_v32 }
 0x1a8   : > { %v2686_v44 = vmax.f32 %v2670_v61, 0.0  ;;  %v2671_v42 = vadd.f32 %v3371_v29, %v4646_v32 }
 0x1a9   : > { %2694 = vxpose.xlu0.b32.cont [7/16] (narrow) %v2678_v1, 8  ;;  %v2684_v34 = vmax.f32 %v2668_v46, 0.0  ;;  %v2669_v3 = vadd.f32 %v3372_v20, %v4646_v32 }
 0x1aa   : > { %v2687_v2 = vmax.f32 %v2671_v42, 0.0 }
 0x1ab   : > { %v2685_v9 = vmax.f32 %v2669_v3, 0.0 }
 0x1ad   : > { %2695 = vxpose.xlu0.b32.cont [8/16] (narrow) %v2679_v21, 8 }
 0x1b1   : > { %2696 = vxpose.xlu0.b32.cont [9/16] (narrow) %v2680_v14, 8 }
 0x1b5   : > { %2697 = vxpose.xlu0.b32.cont [10/16] (narrow) %v2681_v5, 8 }
 0x1b9   : > { %2698 = vxpose.xlu0.b32.cont [11/16] (narrow) %v2682_v37, 8 }
 0x1bd   : > { %2699 = vxpose.xlu0.b32.cont [12/16] (narrow) %v2683_v0, 8 }
 0x1c1   : > { %2700 = vxpose.xlu0.b32.cont [13/16] (narrow) %v2684_v34, 8 }
 0x1c5   : > { %2701 = vxpose.xlu0.b32.cont [14/16] (narrow) %v2685_v9, 8 }
 0x1c9   : > { %2702 = vxpose.xlu0.b32.cont [15/16] (narrow) %v2686_v44, 8 }
 0x1cd   : > { %2703 = vxpose.xlu0.b32.end [16/16] (narrow) %v2687_v2, 8 }
 0x211   : > { %v2704_v32 = vpop.trf.xlu0 }
 0x212   : > { %2720 = vst [vmem:[%s177_s9] sm:$0xff] %v2704_v32 }
 0x213   : > { %3605 = shalt.err (!%p3602_p6)
}
 0x214   : > { %s3606_s4 = scalar_lea.hbm %s4672_s24, 128  ;;  %s3610_s7 = scalar_lea.hbm %s4726_s3, 512 }
 0x215   : > { %p3607_p7 = scmp.ne.s32.totalorder %s4672_s24, %s3606_s4  ;;  %p3611_p11 = scmp.lt.u32.totalorder %s4672_s24, %s4726_s3 }
 0x216   : > { %p3612_p12 = scmp.lt.u32.totalorder %s3610_s7, %s3606_s4  ;;  %p3614_p0 = scmp.lt.u32.totalorder %s3606_s4, %s4672_s24 }
 0x217   : > { %p3608_p9 = pnand %p3607_p7, %p3760_p3 }
 0x218   : > { %p3613_p13 = por %p3612_p12, %p3611_p11 }
 0x219   : > { %p3609_p10 = pneg %p3608_p9 }
 0x21a   : > { %p3615_p1 = por %p3614_p0, %p3613_p13 }
 0x21c   : > { %p3616_p2 = pnand %p3615_p1, %p3609_p10 }
 0x21e   : > { %3619 = shalt.err (!%p3616_p2)
}
 0x21f   : > { %3496 = dma.vmem_to_hbm [thread:$0]  (%p3760_p3), %s4667_s10, 128, %s4672_s24, %s2722_s27  }
 0x220 PF: > { %p3502_p4 = scmp.ge.s32.totalorder %s3686_s19, 2  ;;  %s2749_s11 = sand.u32 1, %s3658_s12  }
 0x221   : > { %s2750_s20 = scalar_lea.sflag [#allocation3], %s2749_s11 }
 0x222   : > { %p3499_p5 = pnand %p3502_p4, %p3769_p8 }
 0x224   : > { %3653 = dma.done.wait (!%p3499_p5), %s2750_s20, 128  }
 0x225   : > { %3655 = vsyncadd (!%p3499_p5), %s2750_s20, 4294967168  ;;  %s16_s19 = sadd.s32 1, %s3686_s19   ;;  %s4751_s12 = smov %s3662_s13 }
 0x226   : > { %p13_p6 = scmp.ge.s32.totalorder %s16_s19, 6   ;;  %s4752_s13 = smov %s3666_s14 }
 0x227   : > { %s4753_s14 = smov %s3778_s30  ;;  %s4754_s15 = smov %s3678_s17 }
 0x228   : > { %s4755_s16 = smov %s3682_s18  ;;  %s4756_s17 = smov %s4759_s22 }
 0x229   : > { %s4757_s18 = smov %s4763_s23  ;;  %15 = sbr.rel (!%p13_p6) target bundleno = 5 (0x5), region = 78 }
 0x230   :  { %2755 = vsyncpa [#allocation3], 1 }
 0x231   :  { %2757 = vsyncpa [#allocation3 + $0x1], 1 }

</bundles_post_ra>
